<compile_context>
chip_gen: v7x
topology: tpu7x:2x2x1
jax: 0.10.0
libtpu: 0.0.40
codegen_flags: <defaults>
</compile_context>

<pallas_src>
import math
from functools import partial

import jax
import jax.numpy as jnp
from jax import lax
from jax.experimental import pallas as pl
from jax.experimental.pallas import tpu as pltpu

# ---------------- model config (small, BERT-like) ----------------
SEQ = 8
HIDDEN = 128
NUM_HEADS = 2
HEAD_DIM = HIDDEN // NUM_HEADS
INTERMEDIATE = 256
NUM_LAYERS = 2
NUM_LABELS = 16
VOCAB = 512
MAX_POS = 32
CLS_PAD = 128  # lane-dense padding for the classifier head

LABEL_TO_TYPE = {0: 'INFJ', 1: 'ENTP', 2: 'INTP', 3: 'INTJ', 4: 'ENTJ', 5: 'ENFJ',
                 6: 'INFP', 7: 'ENFP', 8: 'ISFP', 9: 'ISTP', 10: 'ISFJ', 11: 'ISTJ',
                 12: 'ESTP', 13: 'ESFP', 14: 'ESTJ', 15: 'ESFJ'}


# ---------------- single fused Pallas kernel ----------------
def _mbti_fwd_kernel(emb_ref, mask_ref, eg_ref, eb_ref,
                     wqkv_ref, bqkv_ref, wo_ref, bo_ref, ln1g_ref, ln1b_ref,
                     w1_ref, b1_ref, w2_ref, b2_ref, ln2g_ref, ln2b_ref,
                     poolw_ref, poolb_ref, clsw_ref, clsb_ref,
                     probs_ref):
    inv_sqrt2 = 1.0 / math.sqrt(2.0)
    scale = 1.0 / math.sqrt(HEAD_DIM)

    def layernorm(x, g, b):
        mu = jnp.mean(x, axis=-1, keepdims=True)
        xc = x - mu
        var = jnp.mean(xc * xc, axis=-1, keepdims=True)
        return xc * lax.rsqrt(var + 1e-12) * g + b

    def matmul(a, b):
        return jnp.dot(a, b, preferred_element_type=jnp.float32)

    # embedding layernorm
    x = layernorm(emb_ref[...], eg_ref[...], eb_ref[...])
    mask = mask_ref[...]  # [1, SEQ] additive key-mask (0 real / -1e30 pad)

    # encoder layers, fully unrolled; everything stays in vregs / VMEM
    for l in range(NUM_LAYERS):
        # fused QKV projection: [SEQ, 3*HIDDEN]
        qkv = matmul(x, wqkv_ref[l]) + bqkv_ref[l]

        heads = []
        for h in range(NUM_HEADS):
            q = qkv[:, h * HEAD_DIM:(h + 1) * HEAD_DIM]
            k = qkv[:, HIDDEN + h * HEAD_DIM:HIDDEN + (h + 1) * HEAD_DIM]
            v = qkv[:, 2 * HIDDEN + h * HEAD_DIM:2 * HIDDEN + (h + 1) * HEAD_DIM]
            # q @ k^T via dot_general (contract last dims) -> [SEQ, SEQ]
            s = lax.dot_general(q, k, (((1,), (1,)), ((), ())),
                                preferred_element_type=jnp.float32) * scale + mask
            m = jnp.max(s, axis=-1, keepdims=True)
            e = jnp.exp(s - m)
            p = e * pl.reciprocal(jnp.sum(e, axis=-1, keepdims=True), approx=True)
            heads.append(matmul(p, v))            # [SEQ, HEAD_DIM]
        ctx = jnp.concatenate(heads, axis=-1)     # [SEQ, HIDDEN]

        # output projection + residual + layernorm (fused)
        attn = matmul(ctx, wo_ref[l]) + bo_ref[l]
        x = layernorm(attn + x, ln1g_ref[l], ln1b_ref[l])

        # FFN: gelu(x @ w1 + b1) @ w2 + b2, + residual + layernorm (fused)
        h1 = matmul(x, w1_ref[l]) + b1_ref[l]
        h1 = 0.5 * h1 * (1.0 + lax.erf(h1 * inv_sqrt2))   # exact gelu, as in BERT
        ff = matmul(h1, w2_ref[l]) + b2_ref[l]
        x = layernorm(ff + x, ln2g_ref[l], ln2b_ref[l])

    # pooler (tanh on [CLS]) + classifier + softmax over the 128-lane-padded logits
    cls_vec = x[0:1, :]
    pooled = jnp.tanh(matmul(cls_vec, poolw_ref[...]) + poolb_ref[...])
    logits = matmul(pooled, clsw_ref[...]) + clsb_ref[...]   # pad cols biased to -1e30
    m = jnp.max(logits, axis=-1, keepdims=True)
    e = jnp.exp(logits - m)
    # exact divide for the final probabilities so they sum to 1 within f32 rounding
    probs_ref[...] = e / jnp.sum(e, axis=-1, keepdims=True)


def _fused_forward(emb, mask, pk):
    inputs = (emb, mask, pk['emb_ln_g'], pk['emb_ln_b'],
              pk['wqkv'], pk['bqkv'], pk['wo'], pk['bo'], pk['ln1_g'], pk['ln1_b'],
              pk['w1'], pk['b1'], pk['w2'], pk['b2'], pk['ln2_g'], pk['ln2_b'],
              pk['pool_w'], pk['pool_b'], pk['cls_w'], pk['cls_b'])
    return pl.pallas_call(
        _mbti_fwd_kernel,
        out_shape=jax.ShapeDtypeStruct((1, CLS_PAD), jnp.float32),
        in_specs=[pl.BlockSpec(memory_space=pltpu.MemorySpace.VMEM) for _ in inputs],
        out_specs=pl.BlockSpec(memory_space=pltpu.MemorySpace.VMEM),
    )(*inputs)


# ---------------- parameter init (deterministic, synthetic) ----------------
def init_params(key):
    keys = iter(jax.random.split(key, 8 + NUM_LAYERS * 8))

    def w(shape):
        return 0.02 * jax.random.normal(next(keys), shape, dtype=jnp.float32)

    params = {
        'word_emb': w((VOCAB, HIDDEN)),
        'pos_emb': w((MAX_POS, HIDDEN)),
        'type_emb': w((2, HIDDEN)),
        'emb_ln_g': jnp.ones((HIDDEN,), jnp.float32),
        'emb_ln_b': jnp.zeros((HIDDEN,), jnp.float32),
        'layers': [],
        'pooler_w': w((HIDDEN, HIDDEN)),
        'pooler_b': jnp.zeros((HIDDEN,), jnp.float32),
        'cls_w': w((HIDDEN, NUM_LABELS)),
        'cls_b': jnp.zeros((NUM_LABELS,), jnp.float32),
    }
    for _ in range(NUM_LAYERS):
        params['layers'].append({
            'wq': w((HIDDEN, HIDDEN)), 'bq': jnp.zeros((HIDDEN,), jnp.float32),
            'wk': w((HIDDEN, HIDDEN)), 'bk': jnp.zeros((HIDDEN,), jnp.float32),
            'wv': w((HIDDEN, HIDDEN)), 'bv': jnp.zeros((HIDDEN,), jnp.float32),
            'wo': w((HIDDEN, HIDDEN)), 'bo': jnp.zeros((HIDDEN,), jnp.float32),
            'w1': w((HIDDEN, INTERMEDIATE)), 'b1': jnp.zeros((INTERMEDIATE,), jnp.float32),
            'w2': w((INTERMEDIATE, HIDDEN)), 'b2': jnp.zeros((HIDDEN,), jnp.float32),
            'ln1_g': jnp.ones((HIDDEN,), jnp.float32), 'ln1_b': jnp.zeros((HIDDEN,), jnp.float32),
            'ln2_g': jnp.ones((HIDDEN,), jnp.float32), 'ln2_b': jnp.zeros((HIDDEN,), jnp.float32),
        })
    return params


def pack_params(p):
    """One-time repack: stack per-layer weights, fuse QKV, pad classifier to 128 lanes."""
    L = p['layers']

    def stack(name):
        return jnp.stack([l[name] for l in L])

    def stack_bias(name):
        return jnp.stack([l[name][None, :] for l in L])

    cls_b_pad = jnp.concatenate(
        [p['cls_b'], jnp.full((CLS_PAD - NUM_LABELS,), -1e30, jnp.float32)]).reshape(1, CLS_PAD)

    return {
        'word_emb': p['word_emb'],
        'pos_type': p['pos_emb'][:SEQ] + p['type_emb'][0][None, :],     # [SEQ, HIDDEN]
        'emb_ln_g': p['emb_ln_g'].reshape(1, HIDDEN),
        'emb_ln_b': p['emb_ln_b'].reshape(1, HIDDEN),
        'wqkv': jnp.stack([jnp.concatenate([l['wq'], l['wk'], l['wv']], axis=1) for l in L]),
        'bqkv': jnp.stack([jnp.concatenate([l['bq'], l['bk'], l['bv']])[None, :] for l in L]),
        'wo': stack('wo'), 'bo': stack_bias('bo'),
        'ln1_g': stack_bias('ln1_g'), 'ln1_b': stack_bias('ln1_b'),
        'w1': stack('w1'), 'b1': stack_bias('b1'),
        'w2': stack('w2'), 'b2': stack_bias('b2'),
        'ln2_g': stack_bias('ln2_g'), 'ln2_b': stack_bias('ln2_b'),
        'pool_w': p['pooler_w'],
        'pool_b': p['pooler_b'].reshape(1, HIDDEN),
        'cls_w': jnp.pad(p['cls_w'], ((0, 0), (0, CLS_PAD - NUM_LABELS))),
        'cls_b': cls_b_pad,
    }


# ---------------- forward pass ----------------
def fake_tokenize(text, seq_len=SEQ):
    # TODO(synk): real WordPiece tokenization ('bert-base-multilingual-uncased') has no
    # Pallas equivalent; deterministic byte-hash tokenizer stub used instead.
    ids = [101] + [(ord(c) % (VOCAB - 4)) + 4 for c in text][: seq_len - 2] + [102]
    ids = ids + [0] * (seq_len - len(ids))
    return jnp.array(ids[:seq_len], dtype=jnp.int32)


@jax.jit
def _forward_from_ids(token_ids, pk):
    # TODO(synk): the 8-row embedding gather stays as a tiny XLA jnp.take; it could be
    # moved in-kernel via scalar-prefetched token ids, but the win is marginal.
    emb = jnp.take(pk['word_emb'], token_ids, axis=0) + pk['pos_type']          # [SEQ, HIDDEN]
    # additive attention mask for padded positions (token id 0), as BERT uses attention_mask
    mask = jnp.where(token_ids > 0, 0.0, -1e30).astype(jnp.float32).reshape(1, SEQ)
    probs_pad = _fused_forward(emb, mask, pk)                                   # [1, 128]
    return probs_pad[:, :NUM_LABELS]                                            # [1, 16]


def mbti_forward(text_ja, packed_params):
    token_ids = fake_tokenize(text_ja)
    return _forward_from_ids(token_ids, packed_params)


def label2type(label):
    return LABEL_TO_TYPE[int(label)]


if __name__ == "__main__":
    key = jax.random.PRNGKey(0)
    params = init_params(key)
    packed = pack_params(params)

    text_ja = "こんにちは、私はエンジニアです。"
    probs = mbti_forward(text_ja, packed)
    probs = jax.block_until_ready(probs)

    predicted_type = label2type(jnp.argmax(probs))  # e.g. 'INFJ' .. 'ESFJ'
    assert probs.shape == (1, NUM_LABELS)
    assert abs(float(jnp.sum(probs)) - 1.0) < 1e-4
    assert predicted_type in LABEL_TO_TYPE.values()
    print("KERNEL_OK")
</pallas_src>

<mosaic_0001>
module attributes {stable_mosaic.version = 11 : i64} {
  func.func @_mbti_fwd_kernel(%arg0: memref<8x128xf32, #tpu.memory_space<vmem>>, %arg1: memref<1x8xf32, #tpu.memory_space<vmem>>, %arg2: memref<1x128xf32, #tpu.memory_space<vmem>>, %arg3: memref<1x128xf32, #tpu.memory_space<vmem>>, %arg4: memref<2x128x384xf32, #tpu.memory_space<vmem>>, %arg5: memref<2x1x384xf32, #tpu.memory_space<vmem>>, %arg6: memref<2x128x128xf32, #tpu.memory_space<vmem>>, %arg7: memref<2x1x128xf32, #tpu.memory_space<vmem>>, %arg8: memref<2x1x128xf32, #tpu.memory_space<vmem>>, %arg9: memref<2x1x128xf32, #tpu.memory_space<vmem>>, %arg10: memref<2x128x256xf32, #tpu.memory_space<vmem>>, %arg11: memref<2x1x256xf32, #tpu.memory_space<vmem>>, %arg12: memref<2x256x128xf32, #tpu.memory_space<vmem>>, %arg13: memref<2x1x128xf32, #tpu.memory_space<vmem>>, %arg14: memref<2x1x128xf32, #tpu.memory_space<vmem>>, %arg15: memref<2x1x128xf32, #tpu.memory_space<vmem>>, %arg16: memref<128x128xf32, #tpu.memory_space<vmem>>, %arg17: memref<1x128xf32, #tpu.memory_space<vmem>>, %arg18: memref<128x128xf32, #tpu.memory_space<vmem>>, %arg19: memref<1x128xf32, #tpu.memory_space<vmem>>, %arg20: memref<1x128xf32, #tpu.memory_space<vmem>>) attributes {dimension_semantics = [], scalar_prefetch = 0 : i64, scratch_operands = 0 : i64, tpu.core_type = #tpu.core_type<tc>} {
    %c0 = arith.constant 0 : index
    %c0_0 = arith.constant 0 : index
    %0 = vector.load %arg0[%c0, %c0_0] : memref<8x128xf32, #tpu.memory_space<vmem>>, vector<8x128xf32>
    %c0_1 = arith.constant 0 : index
    %c0_2 = arith.constant 0 : index
    %1 = vector.load %arg2[%c0_1, %c0_2] : memref<1x128xf32, #tpu.memory_space<vmem>>, vector<1x128xf32>
    %c0_3 = arith.constant 0 : index
    %c0_4 = arith.constant 0 : index
    %2 = vector.load %arg3[%c0_3, %c0_4] : memref<1x128xf32, #tpu.memory_space<vmem>>, vector<1x128xf32>
    %cst = arith.constant dense<0.000000e+00> : vector<8xf32>
    %3 = vector.multi_reduction <add>, %0, %cst [1] : vector<8x128xf32> to vector<8xf32>
    %4 = vector.shape_cast %3 : vector<8xf32> to vector<8x1xf32>
    %cst_5 = arith.constant 1.280000e+02 : f32
    %5 = vector.broadcast %cst_5 : f32 to vector<8x1xf32>
    %6 = arith.divf %4, %5 : vector<8x1xf32>
    %7 = vector.broadcast %6 : vector<8x1xf32> to vector<8x128xf32>
    %8 = arith.subf %0, %7 : vector<8x128xf32>
    %9 = arith.mulf %8, %8 : vector<8x128xf32>
    %cst_6 = arith.constant dense<0.000000e+00> : vector<8xf32>
    %10 = vector.multi_reduction <add>, %9, %cst_6 [1] : vector<8x128xf32> to vector<8xf32>
    %11 = vector.shape_cast %10 : vector<8xf32> to vector<8x1xf32>
    %cst_7 = arith.constant 1.280000e+02 : f32
    %12 = vector.broadcast %cst_7 : f32 to vector<8x1xf32>
    %13 = arith.divf %11, %12 : vector<8x1xf32>
    %cst_8 = arith.constant 9.99999996E-13 : f32
    %14 = vector.broadcast %cst_8 : f32 to vector<8x1xf32>
    %15 = arith.addf %13, %14 : vector<8x1xf32>
    %16 = math.rsqrt %15 : vector<8x1xf32>
    %17 = vector.broadcast %16 : vector<8x1xf32> to vector<8x128xf32>
    %18 = arith.mulf %8, %17 : vector<8x128xf32>
    %19 = vector.broadcast %1 : vector<1x128xf32> to vector<8x128xf32>
    %20 = arith.mulf %18, %19 : vector<8x128xf32>
    %21 = vector.broadcast %2 : vector<1x128xf32> to vector<8x128xf32>
    %22 = arith.addf %20, %21 : vector<8x128xf32>
    %c0_9 = arith.constant 0 : index
    %c0_10 = arith.constant 0 : index
    %23 = vector.load %arg1[%c0_9, %c0_10] : memref<1x8xf32, #tpu.memory_space<vmem>>, vector<1x8xf32>
    %c0_11 = arith.constant 0 : index
    %c0_12 = arith.constant 0 : index
    %c0_13 = arith.constant 0 : index
    %24 = vector.load %arg4[%c0_11, %c0_12, %c0_13] : memref<2x128x384xf32, #tpu.memory_space<vmem>>, vector<1x128x384xf32>
    %25 = vector.shape_cast %24 : vector<1x128x384xf32> to vector<128x384xf32>
    %cst_14 = arith.constant dense<0.000000e+00> : vector<8x384xf32>
    %26 = tpu.matmul %22, %25, %cst_14 {dimension_numbers = #tpu.dot_dimension_numbers<[1], [0], [0], [1], [0, 0, 1, 1], [], []>} : vector<8x128xf32>, vector<128x384xf32>, vector<8x384xf32> -> vector<8x384xf32>
    %c0_15 = arith.constant 0 : index
    %c0_16 = arith.constant 0 : index
    %c0_17 = arith.constant 0 : index
    %27 = vector.load %arg5[%c0_15, %c0_16, %c0_17] : memref<2x1x384xf32, #tpu.memory_space<vmem>>, vector<1x1x384xf32>
    %28 = vector.shape_cast %27 : vector<1x1x384xf32> to vector<1x384xf32>
    %29 = vector.broadcast %28 : vector<1x384xf32> to vector<8x384xf32>
    %30 = arith.addf %26, %29 : vector<8x384xf32>
    %31 = vector.extract_strided_slice %30 {offsets = [0, 0], sizes = [8, 64], strides = [1, 1]} : vector<8x384xf32> to vector<8x64xf32>
    %32 = vector.extract_strided_slice %30 {offsets = [0, 128], sizes = [8, 64], strides = [1, 1]} : vector<8x384xf32> to vector<8x64xf32>
    %33 = vector.extract_strided_slice %30 {offsets = [0, 256], sizes = [8, 64], strides = [1, 1]} : vector<8x384xf32> to vector<8x64xf32>
    %cst_18 = arith.constant dense<0.000000e+00> : vector<8x8xf32>
    %34 = tpu.matmul %31, %32, %cst_18 {dimension_numbers = #tpu.dot_dimension_numbers<[1], [1], [0], [0], [0, 0, 1, 0], [], []>} : vector<8x64xf32>, vector<8x64xf32>, vector<8x8xf32> -> vector<8x8xf32>
    %cst_19 = arith.constant 1.250000e-01 : f32
    %35 = vector.broadcast %cst_19 : f32 to vector<8x8xf32>
    %36 = arith.mulf %34, %35 : vector<8x8xf32>
    %37 = vector.broadcast %23 : vector<1x8xf32> to vector<8x8xf32>
    %38 = arith.addf %36, %37 : vector<8x8xf32>
    %cst_20 = arith.constant dense<0xFF800000> : vector<8xf32>
    %39 = vector.multi_reduction <maximumf>, %38, %cst_20 [1] : vector<8x8xf32> to vector<8xf32>
    %40 = vector.shape_cast %39 : vector<8xf32> to vector<8x1xf32>
    %41 = vector.broadcast %40 : vector<8x1xf32> to vector<8x8xf32>
    %42 = arith.subf %38, %41 : vector<8x8xf32>
    %43 = math.exp %42 : vector<8x8xf32>
    %cst_21 = arith.constant dense<0.000000e+00> : vector<8xf32>
    %44 = vector.multi_reduction <add>, %43, %cst_21 [1] : vector<8x8xf32> to vector<8xf32>
    %45 = vector.shape_cast %44 : vector<8xf32> to vector<8x1xf32>
    %46 = tpu.reciprocal %45 {approx = true} : vector<8x1xf32> -> vector<8x1xf32>
    %47 = vector.broadcast %46 : vector<8x1xf32> to vector<8x8xf32>
    %48 = arith.mulf %43, %47 : vector<8x8xf32>
    %cst_22 = arith.constant dense<0.000000e+00> : vector<8x64xf32>
    %49 = tpu.matmul %48, %33, %cst_22 {dimension_numbers = #tpu.dot_dimension_numbers<[1], [0], [0], [1], [0, 0, 1, 1], [], []>} : vector<8x8xf32>, vector<8x64xf32>, vector<8x64xf32> -> vector<8x64xf32>
    %50 = vector.extract_strided_slice %30 {offsets = [0, 64], sizes = [8, 64], strides = [1, 1]} : vector<8x384xf32> to vector<8x64xf32>
    %51 = vector.extract_strided_slice %30 {offsets = [0, 192], sizes = [8, 64], strides = [1, 1]} : vector<8x384xf32> to vector<8x64xf32>
    %52 = vector.extract_strided_slice %30 {offsets = [0, 320], sizes = [8, 64], strides = [1, 1]} : vector<8x384xf32> to vector<8x64xf32>
    %cst_23 = arith.constant dense<0.000000e+00> : vector<8x8xf32>
    %53 = tpu.matmul %50, %51, %cst_23 {dimension_numbers = #tpu.dot_dimension_numbers<[1], [1], [0], [0], [0, 0, 1, 0], [], []>} : vector<8x64xf32>, vector<8x64xf32>, vector<8x8xf32> -> vector<8x8xf32>
    %cst_24 = arith.constant 1.250000e-01 : f32
    %54 = vector.broadcast %cst_24 : f32 to vector<8x8xf32>
    %55 = arith.mulf %53, %54 : vector<8x8xf32>
    %56 = vector.broadcast %23 : vector<1x8xf32> to vector<8x8xf32>
    %57 = arith.addf %55, %56 : vector<8x8xf32>
    %cst_25 = arith.constant dense<0xFF800000> : vector<8xf32>
    %58 = vector.multi_reduction <maximumf>, %57, %cst_25 [1] : vector<8x8xf32> to vector<8xf32>
    %59 = vector.shape_cast %58 : vector<8xf32> to vector<8x1xf32>
    %60 = vector.broadcast %59 : vector<8x1xf32> to vector<8x8xf32>
    %61 = arith.subf %57, %60 : vector<8x8xf32>
    %62 = math.exp %61 : vector<8x8xf32>
    %cst_26 = arith.constant dense<0.000000e+00> : vector<8xf32>
    %63 = vector.multi_reduction <add>, %62, %cst_26 [1] : vector<8x8xf32> to vector<8xf32>
    %64 = vector.shape_cast %63 : vector<8xf32> to vector<8x1xf32>
    %65 = tpu.reciprocal %64 {approx = true} : vector<8x1xf32> -> vector<8x1xf32>
    %66 = vector.broadcast %65 : vector<8x1xf32> to vector<8x8xf32>
    %67 = arith.mulf %62, %66 : vector<8x8xf32>
    %cst_27 = arith.constant dense<0.000000e+00> : vector<8x64xf32>
    %68 = tpu.matmul %67, %52, %cst_27 {dimension_numbers = #tpu.dot_dimension_numbers<[1], [0], [0], [1], [0, 0, 1, 1], [], []>} : vector<8x8xf32>, vector<8x64xf32>, vector<8x64xf32> -> vector<8x64xf32>
    %69 = tpu.concatenate %49, %68 in 1 : vector<8x64xf32>, vector<8x64xf32> -> vector<8x128xf32>
    %c0_28 = arith.constant 0 : index
    %c0_29 = arith.constant 0 : index
    %c0_30 = arith.constant 0 : index
    %70 = vector.load %arg6[%c0_28, %c0_29, %c0_30] : memref<2x128x128xf32, #tpu.memory_space<vmem>>, vector<1x128x128xf32>
    %71 = vector.shape_cast %70 : vector<1x128x128xf32> to vector<128x128xf32>
    %cst_31 = arith.constant dense<0.000000e+00> : vector<8x128xf32>
    %72 = tpu.matmul %69, %71, %cst_31 {dimension_numbers = #tpu.dot_dimension_numbers<[1], [0], [0], [1], [0, 0, 1, 1], [], []>} : vector<8x128xf32>, vector<128x128xf32>, vector<8x128xf32> -> vector<8x128xf32>
    %c0_32 = arith.constant 0 : index
    %c0_33 = arith.constant 0 : index
    %c0_34 = arith.constant 0 : index
    %73 = vector.load %arg7[%c0_32, %c0_33, %c0_34] : memref<2x1x128xf32, #tpu.memory_space<vmem>>, vector<1x1x128xf32>
    %74 = vector.shape_cast %73 : vector<1x1x128xf32> to vector<1x128xf32>
    %75 = vector.broadcast %74 : vector<1x128xf32> to vector<8x128xf32>
    %76 = arith.addf %72, %75 : vector<8x128xf32>
    %77 = arith.addf %76, %22 : vector<8x128xf32>
    %c0_35 = arith.constant 0 : index
    %c0_36 = arith.constant 0 : index
    %c0_37 = arith.constant 0 : index
    %78 = vector.load %arg8[%c0_35, %c0_36, %c0_37] : memref<2x1x128xf32, #tpu.memory_space<vmem>>, vector<1x1x128xf32>
    %79 = vector.shape_cast %78 : vector<1x1x128xf32> to vector<1x128xf32>
    %c0_38 = arith.constant 0 : index
    %c0_39 = arith.constant 0 : index
    %c0_40 = arith.constant 0 : index
    %80 = vector.load %arg9[%c0_38, %c0_39, %c0_40] : memref<2x1x128xf32, #tpu.memory_space<vmem>>, vector<1x1x128xf32>
    %81 = vector.shape_cast %80 : vector<1x1x128xf32> to vector<1x128xf32>
    %cst_41 = arith.constant dense<0.000000e+00> : vector<8xf32>
    %82 = vector.multi_reduction <add>, %77, %cst_41 [1] : vector<8x128xf32> to vector<8xf32>
    %83 = vector.shape_cast %82 : vector<8xf32> to vector<8x1xf32>
    %cst_42 = arith.constant 1.280000e+02 : f32
    %84 = vector.broadcast %cst_42 : f32 to vector<8x1xf32>
    %85 = arith.divf %83, %84 : vector<8x1xf32>
    %86 = vector.broadcast %85 : vector<8x1xf32> to vector<8x128xf32>
    %87 = arith.subf %77, %86 : vector<8x128xf32>
    %88 = arith.mulf %87, %87 : vector<8x128xf32>
    %cst_43 = arith.constant dense<0.000000e+00> : vector<8xf32>
    %89 = vector.multi_reduction <add>, %88, %cst_43 [1] : vector<8x128xf32> to vector<8xf32>
    %90 = vector.shape_cast %89 : vector<8xf32> to vector<8x1xf32>
    %cst_44 = arith.constant 1.280000e+02 : f32
    %91 = vector.broadcast %cst_44 : f32 to vector<8x1xf32>
    %92 = arith.divf %90, %91 : vector<8x1xf32>
    %cst_45 = arith.constant 9.99999996E-13 : f32
    %93 = vector.broadcast %cst_45 : f32 to vector<8x1xf32>
    %94 = arith.addf %92, %93 : vector<8x1xf32>
    %95 = math.rsqrt %94 : vector<8x1xf32>
    %96 = vector.broadcast %95 : vector<8x1xf32> to vector<8x128xf32>
    %97 = arith.mulf %87, %96 : vector<8x128xf32>
    %98 = vector.broadcast %79 : vector<1x128xf32> to vector<8x128xf32>
    %99 = arith.mulf %97, %98 : vector<8x128xf32>
    %100 = vector.broadcast %81 : vector<1x128xf32> to vector<8x128xf32>
    %101 = arith.addf %99, %100 : vector<8x128xf32>
    %c0_46 = arith.constant 0 : index
    %c0_47 = arith.constant 0 : index
    %c0_48 = arith.constant 0 : index
    %102 = vector.load %arg10[%c0_46, %c0_47, %c0_48] : memref<2x128x256xf32, #tpu.memory_space<vmem>>, vector<1x128x256xf32>
    %103 = vector.shape_cast %102 : vector<1x128x256xf32> to vector<128x256xf32>
    %cst_49 = arith.constant dense<0.000000e+00> : vector<8x256xf32>
    %104 = tpu.matmul %101, %103, %cst_49 {dimension_numbers = #tpu.dot_dimension_numbers<[1], [0], [0], [1], [0, 0, 1, 1], [], []>} : vector<8x128xf32>, vector<128x256xf32>, vector<8x256xf32> -> vector<8x256xf32>
    %c0_50 = arith.constant 0 : index
    %c0_51 = arith.constant 0 : index
    %c0_52 = arith.constant 0 : index
    %105 = vector.load %arg11[%c0_50, %c0_51, %c0_52] : memref<2x1x256xf32, #tpu.memory_space<vmem>>, vector<1x1x256xf32>
    %106 = vector.shape_cast %105 : vector<1x1x256xf32> to vector<1x256xf32>
    %107 = vector.broadcast %106 : vector<1x256xf32> to vector<8x256xf32>
    %108 = arith.addf %104, %107 : vector<8x256xf32>
    %cst_53 = arith.constant 5.000000e-01 : f32
    %109 = vector.broadcast %cst_53 : f32 to vector<8x256xf32>
    %110 = arith.mulf %109, %108 : vector<8x256xf32>
    %cst_54 = arith.constant 0.707106769 : f32
    %111 = vector.broadcast %cst_54 : f32 to vector<8x256xf32>
    %112 = arith.mulf %108, %111 : vector<8x256xf32>
    %113 = math.erf %112 : vector<8x256xf32>
    %cst_55 = arith.constant 1.000000e+00 : f32
    %114 = vector.broadcast %cst_55 : f32 to vector<8x256xf32>
    %115 = arith.addf %114, %113 : vector<8x256xf32>
    %116 = arith.mulf %110, %115 : vector<8x256xf32>
    %c0_56 = arith.constant 0 : index
    %c0_57 = arith.constant 0 : index
    %c0_58 = arith.constant 0 : index
    %117 = vector.load %arg12[%c0_56, %c0_57, %c0_58] : memref<2x256x128xf32, #tpu.memory_space<vmem>>, vector<1x256x128xf32>
    %118 = vector.shape_cast %117 : vector<1x256x128xf32> to vector<256x128xf32>
    %cst_59 = arith.constant dense<0.000000e+00> : vector<8x128xf32>
    %119 = tpu.matmul %116, %118, %cst_59 {dimension_numbers = #tpu.dot_dimension_numbers<[1], [0], [0], [1], [0, 0, 1, 1], [], []>} : vector<8x256xf32>, vector<256x128xf32>, vector<8x128xf32> -> vector<8x128xf32>
    %c0_60 = arith.constant 0 : index
    %c0_61 = arith.constant 0 : index
    %c0_62 = arith.constant 0 : index
    %120 = vector.load %arg13[%c0_60, %c0_61, %c0_62] : memref<2x1x128xf32, #tpu.memory_space<vmem>>, vector<1x1x128xf32>
    %121 = vector.shape_cast %120 : vector<1x1x128xf32> to vector<1x128xf32>
    %122 = vector.broadcast %121 : vector<1x128xf32> to vector<8x128xf32>
    %123 = arith.addf %119, %122 : vector<8x128xf32>
    %124 = arith.addf %123, %101 : vector<8x128xf32>
    %c0_63 = arith.constant 0 : index
    %c0_64 = arith.constant 0 : index
    %c0_65 = arith.constant 0 : index
    %125 = vector.load %arg14[%c0_63, %c0_64, %c0_65] : memref<2x1x128xf32, #tpu.memory_space<vmem>>, vector<1x1x128xf32>
    %126 = vector.shape_cast %125 : vector<1x1x128xf32> to vector<1x128xf32>
    %c0_66 = arith.constant 0 : index
    %c0_67 = arith.constant 0 : index
    %c0_68 = arith.constant 0 : index
    %127 = vector.load %arg15[%c0_66, %c0_67, %c0_68] : memref<2x1x128xf32, #tpu.memory_space<vmem>>, vector<1x1x128xf32>
    %128 = vector.shape_cast %127 : vector<1x1x128xf32> to vector<1x128xf32>
    %cst_69 = arith.constant dense<0.000000e+00> : vector<8xf32>
    %129 = vector.multi_reduction <add>, %124, %cst_69 [1] : vector<8x128xf32> to vector<8xf32>
    %130 = vector.shape_cast %129 : vector<8xf32> to vector<8x1xf32>
    %cst_70 = arith.constant 1.280000e+02 : f32
    %131 = vector.broadcast %cst_70 : f32 to vector<8x1xf32>
    %132 = arith.divf %130, %131 : vector<8x1xf32>
    %133 = vector.broadcast %132 : vector<8x1xf32> to vector<8x128xf32>
    %134 = arith.subf %124, %133 : vector<8x128xf32>
    %135 = arith.mulf %134, %134 : vector<8x128xf32>
    %cst_71 = arith.constant dense<0.000000e+00> : vector<8xf32>
    %136 = vector.multi_reduction <add>, %135, %cst_71 [1] : vector<8x128xf32> to vector<8xf32>
    %137 = vector.shape_cast %136 : vector<8xf32> to vector<8x1xf32>
    %cst_72 = arith.constant 1.280000e+02 : f32
    %138 = vector.broadcast %cst_72 : f32 to vector<8x1xf32>
    %139 = arith.divf %137, %138 : vector<8x1xf32>
    %cst_73 = arith.constant 9.99999996E-13 : f32
    %140 = vector.broadcast %cst_73 : f32 to vector<8x1xf32>
    %141 = arith.addf %139, %140 : vector<8x1xf32>
    %142 = math.rsqrt %141 : vector<8x1xf32>
    %143 = vector.broadcast %142 : vector<8x1xf32> to vector<8x128xf32>
    %144 = arith.mulf %134, %143 : vector<8x128xf32>
    %145 = vector.broadcast %126 : vector<1x128xf32> to vector<8x128xf32>
    %146 = arith.mulf %144, %145 : vector<8x128xf32>
    %147 = vector.broadcast %128 : vector<1x128xf32> to vector<8x128xf32>
    %148 = arith.addf %146, %147 : vector<8x128xf32>
    %c1 = arith.constant 1 : index
    %c0_74 = arith.constant 0 : index
    %c0_75 = arith.constant 0 : index
    %149 = vector.load %arg4[%c1, %c0_74, %c0_75] : memref<2x128x384xf32, #tpu.memory_space<vmem>>, vector<1x128x384xf32>
    %150 = vector.shape_cast %149 : vector<1x128x384xf32> to vector<128x384xf32>
    %cst_76 = arith.constant dense<0.000000e+00> : vector<8x384xf32>
    %151 = tpu.matmul %148, %150, %cst_76 {dimension_numbers = #tpu.dot_dimension_numbers<[1], [0], [0], [1], [0, 0, 1, 1], [], []>} : vector<8x128xf32>, vector<128x384xf32>, vector<8x384xf32> -> vector<8x384xf32>
    %c1_77 = arith.constant 1 : index
    %c0_78 = arith.constant 0 : index
    %c0_79 = arith.constant 0 : index
    %152 = vector.load %arg5[%c1_77, %c0_78, %c0_79] : memref<2x1x384xf32, #tpu.memory_space<vmem>>, vector<1x1x384xf32>
    %153 = vector.shape_cast %152 : vector<1x1x384xf32> to vector<1x384xf32>
    %154 = vector.broadcast %153 : vector<1x384xf32> to vector<8x384xf32>
    %155 = arith.addf %151, %154 : vector<8x384xf32>
    %156 = vector.extract_strided_slice %155 {offsets = [0, 0], sizes = [8, 64], strides = [1, 1]} : vector<8x384xf32> to vector<8x64xf32>
    %157 = vector.extract_strided_slice %155 {offsets = [0, 128], sizes = [8, 64], strides = [1, 1]} : vector<8x384xf32> to vector<8x64xf32>
    %158 = vector.extract_strided_slice %155 {offsets = [0, 256], sizes = [8, 64], strides = [1, 1]} : vector<8x384xf32> to vector<8x64xf32>
    %cst_80 = arith.constant dense<0.000000e+00> : vector<8x8xf32>
    %159 = tpu.matmul %156, %157, %cst_80 {dimension_numbers = #tpu.dot_dimension_numbers<[1], [1], [0], [0], [0, 0, 1, 0], [], []>} : vector<8x64xf32>, vector<8x64xf32>, vector<8x8xf32> -> vector<8x8xf32>
    %cst_81 = arith.constant 1.250000e-01 : f32
    %160 = vector.broadcast %cst_81 : f32 to vector<8x8xf32>
    %161 = arith.mulf %159, %160 : vector<8x8xf32>
    %162 = vector.broadcast %23 : vector<1x8xf32> to vector<8x8xf32>
    %163 = arith.addf %161, %162 : vector<8x8xf32>
    %cst_82 = arith.constant dense<0xFF800000> : vector<8xf32>
    %164 = vector.multi_reduction <maximumf>, %163, %cst_82 [1] : vector<8x8xf32> to vector<8xf32>
    %165 = vector.shape_cast %164 : vector<8xf32> to vector<8x1xf32>
    %166 = vector.broadcast %165 : vector<8x1xf32> to vector<8x8xf32>
    %167 = arith.subf %163, %166 : vector<8x8xf32>
    %168 = math.exp %167 : vector<8x8xf32>
    %cst_83 = arith.constant dense<0.000000e+00> : vector<8xf32>
    %169 = vector.multi_reduction <add>, %168, %cst_83 [1] : vector<8x8xf32> to vector<8xf32>
    %170 = vector.shape_cast %169 : vector<8xf32> to vector<8x1xf32>
    %171 = tpu.reciprocal %170 {approx = true} : vector<8x1xf32> -> vector<8x1xf32>
    %172 = vector.broadcast %171 : vector<8x1xf32> to vector<8x8xf32>
    %173 = arith.mulf %168, %172 : vector<8x8xf32>
    %cst_84 = arith.constant dense<0.000000e+00> : vector<8x64xf32>
    %174 = tpu.matmul %173, %158, %cst_84 {dimension_numbers = #tpu.dot_dimension_numbers<[1], [0], [0], [1], [0, 0, 1, 1], [], []>} : vector<8x8xf32>, vector<8x64xf32>, vector<8x64xf32> -> vector<8x64xf32>
    %175 = vector.extract_strided_slice %155 {offsets = [0, 64], sizes = [8, 64], strides = [1, 1]} : vector<8x384xf32> to vector<8x64xf32>
    %176 = vector.extract_strided_slice %155 {offsets = [0, 192], sizes = [8, 64], strides = [1, 1]} : vector<8x384xf32> to vector<8x64xf32>
    %177 = vector.extract_strided_slice %155 {offsets = [0, 320], sizes = [8, 64], strides = [1, 1]} : vector<8x384xf32> to vector<8x64xf32>
    %cst_85 = arith.constant dense<0.000000e+00> : vector<8x8xf32>
    %178 = tpu.matmul %175, %176, %cst_85 {dimension_numbers = #tpu.dot_dimension_numbers<[1], [1], [0], [0], [0, 0, 1, 0], [], []>} : vector<8x64xf32>, vector<8x64xf32>, vector<8x8xf32> -> vector<8x8xf32>
    %cst_86 = arith.constant 1.250000e-01 : f32
    %179 = vector.broadcast %cst_86 : f32 to vector<8x8xf32>
    %180 = arith.mulf %178, %179 : vector<8x8xf32>
    %181 = vector.broadcast %23 : vector<1x8xf32> to vector<8x8xf32>
    %182 = arith.addf %180, %181 : vector<8x8xf32>
    %cst_87 = arith.constant dense<0xFF800000> : vector<8xf32>
    %183 = vector.multi_reduction <maximumf>, %182, %cst_87 [1] : vector<8x8xf32> to vector<8xf32>
    %184 = vector.shape_cast %183 : vector<8xf32> to vector<8x1xf32>
    %185 = vector.broadcast %184 : vector<8x1xf32> to vector<8x8xf32>
    %186 = arith.subf %182, %185 : vector<8x8xf32>
    %187 = math.exp %186 : vector<8x8xf32>
    %cst_88 = arith.constant dense<0.000000e+00> : vector<8xf32>
    %188 = vector.multi_reduction <add>, %187, %cst_88 [1] : vector<8x8xf32> to vector<8xf32>
    %189 = vector.shape_cast %188 : vector<8xf32> to vector<8x1xf32>
    %190 = tpu.reciprocal %189 {approx = true} : vector<8x1xf32> -> vector<8x1xf32>
    %191 = vector.broadcast %190 : vector<8x1xf32> to vector<8x8xf32>
    %192 = arith.mulf %187, %191 : vector<8x8xf32>
    %cst_89 = arith.constant dense<0.000000e+00> : vector<8x64xf32>
    %193 = tpu.matmul %192, %177, %cst_89 {dimension_numbers = #tpu.dot_dimension_numbers<[1], [0], [0], [1], [0, 0, 1, 1], [], []>} : vector<8x8xf32>, vector<8x64xf32>, vector<8x64xf32> -> vector<8x64xf32>
    %194 = tpu.concatenate %174, %193 in 1 : vector<8x64xf32>, vector<8x64xf32> -> vector<8x128xf32>
    %c1_90 = arith.constant 1 : index
    %c0_91 = arith.constant 0 : index
    %c0_92 = arith.constant 0 : index
    %195 = vector.load %arg6[%c1_90, %c0_91, %c0_92] : memref<2x128x128xf32, #tpu.memory_space<vmem>>, vector<1x128x128xf32>
    %196 = vector.shape_cast %195 : vector<1x128x128xf32> to vector<128x128xf32>
    %cst_93 = arith.constant dense<0.000000e+00> : vector<8x128xf32>
    %197 = tpu.matmul %194, %196, %cst_93 {dimension_numbers = #tpu.dot_dimension_numbers<[1], [0], [0], [1], [0, 0, 1, 1], [], []>} : vector<8x128xf32>, vector<128x128xf32>, vector<8x128xf32> -> vector<8x128xf32>
    %c1_94 = arith.constant 1 : index
    %c0_95 = arith.constant 0 : index
    %c0_96 = arith.constant 0 : index
    %198 = vector.load %arg7[%c1_94, %c0_95, %c0_96] : memref<2x1x128xf32, #tpu.memory_space<vmem>>, vector<1x1x128xf32>
    %199 = vector.shape_cast %198 : vector<1x1x128xf32> to vector<1x128xf32>
    %200 = vector.broadcast %199 : vector<1x128xf32> to vector<8x128xf32>
    %201 = arith.addf %197, %200 : vector<8x128xf32>
    %202 = arith.addf %201, %148 : vector<8x128xf32>
    %c1_97 = arith.constant 1 : index
    %c0_98 = arith.constant 0 : index
    %c0_99 = arith.constant 0 : index
    %203 = vector.load %arg8[%c1_97, %c0_98, %c0_99] : memref<2x1x128xf32, #tpu.memory_space<vmem>>, vector<1x1x128xf32>
    %204 = vector.shape_cast %203 : vector<1x1x128xf32> to vector<1x128xf32>
    %c1_100 = arith.constant 1 : index
    %c0_101 = arith.constant 0 : index
    %c0_102 = arith.constant 0 : index
    %205 = vector.load %arg9[%c1_100, %c0_101, %c0_102] : memref<2x1x128xf32, #tpu.memory_space<vmem>>, vector<1x1x128xf32>
    %206 = vector.shape_cast %205 : vector<1x1x128xf32> to vector<1x128xf32>
    %cst_103 = arith.constant dense<0.000000e+00> : vector<8xf32>
    %207 = vector.multi_reduction <add>, %202, %cst_103 [1] : vector<8x128xf32> to vector<8xf32>
    %208 = vector.shape_cast %207 : vector<8xf32> to vector<8x1xf32>
    %cst_104 = arith.constant 1.280000e+02 : f32
    %209 = vector.broadcast %cst_104 : f32 to vector<8x1xf32>
    %210 = arith.divf %208, %209 : vector<8x1xf32>
    %211 = vector.broadcast %210 : vector<8x1xf32> to vector<8x128xf32>
    %212 = arith.subf %202, %211 : vector<8x128xf32>
    %213 = arith.mulf %212, %212 : vector<8x128xf32>
    %cst_105 = arith.constant dense<0.000000e+00> : vector<8xf32>
    %214 = vector.multi_reduction <add>, %213, %cst_105 [1] : vector<8x128xf32> to vector<8xf32>
    %215 = vector.shape_cast %214 : vector<8xf32> to vector<8x1xf32>
    %cst_106 = arith.constant 1.280000e+02 : f32
    %216 = vector.broadcast %cst_106 : f32 to vector<8x1xf32>
    %217 = arith.divf %215, %216 : vector<8x1xf32>
    %cst_107 = arith.constant 9.99999996E-13 : f32
    %218 = vector.broadcast %cst_107 : f32 to vector<8x1xf32>
    %219 = arith.addf %217, %218 : vector<8x1xf32>
    %220 = math.rsqrt %219 : vector<8x1xf32>
    %221 = vector.broadcast %220 : vector<8x1xf32> to vector<8x128xf32>
    %222 = arith.mulf %212, %221 : vector<8x128xf32>
    %223 = vector.broadcast %204 : vector<1x128xf32> to vector<8x128xf32>
    %224 = arith.mulf %222, %223 : vector<8x128xf32>
    %225 = vector.broadcast %206 : vector<1x128xf32> to vector<8x128xf32>
    %226 = arith.addf %224, %225 : vector<8x128xf32>
    %c1_108 = arith.constant 1 : index
    %c0_109 = arith.constant 0 : index
    %c0_110 = arith.constant 0 : index
    %227 = vector.load %arg10[%c1_108, %c0_109, %c0_110] : memref<2x128x256xf32, #tpu.memory_space<vmem>>, vector<1x128x256xf32>
    %228 = vector.shape_cast %227 : vector<1x128x256xf32> to vector<128x256xf32>
    %cst_111 = arith.constant dense<0.000000e+00> : vector<8x256xf32>
    %229 = tpu.matmul %226, %228, %cst_111 {dimension_numbers = #tpu.dot_dimension_numbers<[1], [0], [0], [1], [0, 0, 1, 1], [], []>} : vector<8x128xf32>, vector<128x256xf32>, vector<8x256xf32> -> vector<8x256xf32>
    %c1_112 = arith.constant 1 : index
    %c0_113 = arith.constant 0 : index
    %c0_114 = arith.constant 0 : index
    %230 = vector.load %arg11[%c1_112, %c0_113, %c0_114] : memref<2x1x256xf32, #tpu.memory_space<vmem>>, vector<1x1x256xf32>
    %231 = vector.shape_cast %230 : vector<1x1x256xf32> to vector<1x256xf32>
    %232 = vector.broadcast %231 : vector<1x256xf32> to vector<8x256xf32>
    %233 = arith.addf %229, %232 : vector<8x256xf32>
    %cst_115 = arith.constant 5.000000e-01 : f32
    %234 = vector.broadcast %cst_115 : f32 to vector<8x256xf32>
    %235 = arith.mulf %234, %233 : vector<8x256xf32>
    %cst_116 = arith.constant 0.707106769 : f32
    %236 = vector.broadcast %cst_116 : f32 to vector<8x256xf32>
    %237 = arith.mulf %233, %236 : vector<8x256xf32>
    %238 = math.erf %237 : vector<8x256xf32>
    %cst_117 = arith.constant 1.000000e+00 : f32
    %239 = vector.broadcast %cst_117 : f32 to vector<8x256xf32>
    %240 = arith.addf %239, %238 : vector<8x256xf32>
    %241 = arith.mulf %235, %240 : vector<8x256xf32>
    %c1_118 = arith.constant 1 : index
    %c0_119 = arith.constant 0 : index
    %c0_120 = arith.constant 0 : index
    %242 = vector.load %arg12[%c1_118, %c0_119, %c0_120] : memref<2x256x128xf32, #tpu.memory_space<vmem>>, vector<1x256x128xf32>
    %243 = vector.shape_cast %242 : vector<1x256x128xf32> to vector<256x128xf32>
    %cst_121 = arith.constant dense<0.000000e+00> : vector<8x128xf32>
    %244 = tpu.matmul %241, %243, %cst_121 {dimension_numbers = #tpu.dot_dimension_numbers<[1], [0], [0], [1], [0, 0, 1, 1], [], []>} : vector<8x256xf32>, vector<256x128xf32>, vector<8x128xf32> -> vector<8x128xf32>
    %c1_122 = arith.constant 1 : index
    %c0_123 = arith.constant 0 : index
    %c0_124 = arith.constant 0 : index
    %245 = vector.load %arg13[%c1_122, %c0_123, %c0_124] : memref<2x1x128xf32, #tpu.memory_space<vmem>>, vector<1x1x128xf32>
    %246 = vector.shape_cast %245 : vector<1x1x128xf32> to vector<1x128xf32>
    %247 = vector.broadcast %246 : vector<1x128xf32> to vector<8x128xf32>
    %248 = arith.addf %244, %247 : vector<8x128xf32>
    %249 = arith.addf %248, %226 : vector<8x128xf32>
    %c1_125 = arith.constant 1 : index
    %c0_126 = arith.constant 0 : index
    %c0_127 = arith.constant 0 : index
    %250 = vector.load %arg14[%c1_125, %c0_126, %c0_127] : memref<2x1x128xf32, #tpu.memory_space<vmem>>, vector<1x1x128xf32>
    %251 = vector.shape_cast %250 : vector<1x1x128xf32> to vector<1x128xf32>
    %c1_128 = arith.constant 1 : index
    %c0_129 = arith.constant 0 : index
    %c0_130 = arith.constant 0 : index
    %252 = vector.load %arg15[%c1_128, %c0_129, %c0_130] : memref<2x1x128xf32, #tpu.memory_space<vmem>>, vector<1x1x128xf32>
    %253 = vector.shape_cast %252 : vector<1x1x128xf32> to vector<1x128xf32>
    %cst_131 = arith.constant dense<0.000000e+00> : vector<8xf32>
    %254 = vector.multi_reduction <add>, %249, %cst_131 [1] : vector<8x128xf32> to vector<8xf32>
    %255 = vector.shape_cast %254 : vector<8xf32> to vector<8x1xf32>
    %cst_132 = arith.constant 1.280000e+02 : f32
    %256 = vector.broadcast %cst_132 : f32 to vector<8x1xf32>
    %257 = arith.divf %255, %256 : vector<8x1xf32>
    %258 = vector.broadcast %257 : vector<8x1xf32> to vector<8x128xf32>
    %259 = arith.subf %249, %258 : vector<8x128xf32>
    %260 = arith.mulf %259, %259 : vector<8x128xf32>
    %cst_133 = arith.constant dense<0.000000e+00> : vector<8xf32>
    %261 = vector.multi_reduction <add>, %260, %cst_133 [1] : vector<8x128xf32> to vector<8xf32>
    %262 = vector.shape_cast %261 : vector<8xf32> to vector<8x1xf32>
    %cst_134 = arith.constant 1.280000e+02 : f32
    %263 = vector.broadcast %cst_134 : f32 to vector<8x1xf32>
    %264 = arith.divf %262, %263 : vector<8x1xf32>
    %cst_135 = arith.constant 9.99999996E-13 : f32
    %265 = vector.broadcast %cst_135 : f32 to vector<8x1xf32>
    %266 = arith.addf %264, %265 : vector<8x1xf32>
    %267 = math.rsqrt %266 : vector<8x1xf32>
    %268 = vector.broadcast %267 : vector<8x1xf32> to vector<8x128xf32>
    %269 = arith.mulf %259, %268 : vector<8x128xf32>
    %270 = vector.broadcast %251 : vector<1x128xf32> to vector<8x128xf32>
    %271 = arith.mulf %269, %270 : vector<8x128xf32>
    %272 = vector.broadcast %253 : vector<1x128xf32> to vector<8x128xf32>
    %273 = arith.addf %271, %272 : vector<8x128xf32>
    %274 = vector.extract_strided_slice %273 {offsets = [0, 0], sizes = [1, 128], strides = [1, 1]} : vector<8x128xf32> to vector<1x128xf32>
    %c0_136 = arith.constant 0 : index
    %c0_137 = arith.constant 0 : index
    %275 = vector.load %arg16[%c0_136, %c0_137] : memref<128x128xf32, #tpu.memory_space<vmem>>, vector<128x128xf32>
    %cst_138 = arith.constant dense<0.000000e+00> : vector<1x128xf32>
    %276 = tpu.matmul %274, %275, %cst_138 {dimension_numbers = #tpu.dot_dimension_numbers<[1], [0], [0], [1], [0, 0, 1, 1], [], []>} : vector<1x128xf32>, vector<128x128xf32>, vector<1x128xf32> -> vector<1x128xf32>
    %c0_139 = arith.constant 0 : index
    %c0_140 = arith.constant 0 : index
    %277 = vector.load %arg17[%c0_139, %c0_140] : memref<1x128xf32, #tpu.memory_space<vmem>>, vector<1x128xf32>
    %278 = arith.addf %276, %277 : vector<1x128xf32>
    %279 = math.tanh %278 : vector<1x128xf32>
    %c0_141 = arith.constant 0 : index
    %c0_142 = arith.constant 0 : index
    %280 = vector.load %arg18[%c0_141, %c0_142] : memref<128x128xf32, #tpu.memory_space<vmem>>, vector<128x128xf32>
    %cst_143 = arith.constant dense<0.000000e+00> : vector<1x128xf32>
    %281 = tpu.matmul %279, %280, %cst_143 {dimension_numbers = #tpu.dot_dimension_numbers<[1], [0], [0], [1], [0, 0, 1, 1], [], []>} : vector<1x128xf32>, vector<128x128xf32>, vector<1x128xf32> -> vector<1x128xf32>
    %c0_144 = arith.constant 0 : index
    %c0_145 = arith.constant 0 : index
    %282 = vector.load %arg19[%c0_144, %c0_145] : memref<1x128xf32, #tpu.memory_space<vmem>>, vector<1x128xf32>
    %283 = arith.addf %281, %282 : vector<1x128xf32>
    %cst_146 = arith.constant dense<0xFF800000> : vector<1xf32>
    %284 = vector.multi_reduction <maximumf>, %283, %cst_146 [1] : vector<1x128xf32> to vector<1xf32>
    %285 = vector.shape_cast %284 : vector<1xf32> to vector<1x1xf32>
    %286 = vector.broadcast %285 : vector<1x1xf32> to vector<1x128xf32>
    %287 = arith.subf %283, %286 : vector<1x128xf32>
    %288 = math.exp %287 : vector<1x128xf32>
    %cst_147 = arith.constant dense<0.000000e+00> : vector<1xf32>
    %289 = vector.multi_reduction <add>, %288, %cst_147 [1] : vector<1x128xf32> to vector<1xf32>
    %290 = vector.shape_cast %289 : vector<1xf32> to vector<1x1xf32>
    %291 = vector.broadcast %290 : vector<1x1xf32> to vector<1x128xf32>
    %292 = arith.divf %288, %291 : vector<1x128xf32>
    %c0_148 = arith.constant 0 : index
    %c0_149 = arith.constant 0 : index
    %293 = vector.load %arg20[%c0_148, %c0_149] : memref<1x128xf32, #tpu.memory_space<vmem>>, vector<1x128xf32>
    tpu.vector_store %arg20[%c0_148, %c0_149], %292 {strides = array<i32>} : memref<1x128xf32, #tpu.memory_space<vmem>>, vector<1x128xf32>,
    return
  }
}

</mosaic_0001>

<bundles_post_ra>
// kernel: _forward_from_ids.1
= control target key start
LH: loop header
LB: loop body
LE: loop exit
PB: predicated region body
PF: predicated region fallthrough
CT: control target
= control target key end

     0   :  { %s3951_s0 = inlined_call_operand.vmem [shape: f32[8,128], index: 0, kind: input, shape index: {}]   ;;  %s3952_s1 = inlined_call_operand.vmem [shape: f32[1,8], index: 1, kind: input, shape index: {}]   ;;  %s3953_s2 = inlined_call_operand.vmem [shape: f32[1,128], index: 2, kind: input, shape index: {}]   ;;  %s3954_s3 = inlined_call_operand.vmem [shape: f32[1,128], index: 3, kind: input, shape index: {}]   ;;  %s3955_s4 = inlined_call_operand.hbm [shape: f32[2,128,384], index: 4, kind: input, shape index: {}]   ;;  %s3956_s5 = inlined_call_operand.vmem [shape: f32[2,1,384], index: 5, kind: input, shape index: {}]   ;;  %s3957_s6 = inlined_call_operand.hbm [shape: f32[2,128,128], index: 6, kind: input, shape index: {}]   ;;  %s3958_s7 = inlined_call_operand.vmem [shape: f32[2,1,128], index: 7, kind: input, shape index: {}]   ;;  %s3959_s8 = inlined_call_operand.hbm [shape: f32[2,1,128], index: 8, kind: input, shape index: {}]   ;;  %s3960_s9 = inlined_call_operand.vmem [shape: f32[2,1,128], index: 9, kind: input, shape index: {}]   ;;  %s3961_s10 = inlined_call_operand.hbm [shape: f32[2,128,256], index: 10, kind: input, shape index: {}]   ;;  %s3962_s11 = inlined_call_operand.vmem [shape: f32[2,1,256], index: 11, kind: input, shape index: {}]   ;;  %s3963_s12 = inlined_call_operand.hbm [shape: f32[2,256,128], index: 12, kind: input, shape index: {}]   ;;  %s3964_s13 = inlined_call_operand.vmem [shape: f32[2,1,128], index: 13, kind: input, shape index: {}]   ;;  %s3965_s14 = inlined_call_operand.hbm [shape: f32[2,1,128], index: 14, kind: input, shape index: {}]   ;;  %s3966_s15 = inlined_call_operand.hbm [shape: f32[2,1,128], index: 15, kind: input, shape index: {}]   ;;  %s3967_s16 = inlined_call_operand.vmem [shape: f32[128,128], index: 16, kind: input, shape index: {}]   ;;  %s3968_s17 = inlined_call_operand.hbm [shape: f32[1,128], index: 17, kind: input, shape index: {}]   ;;  %s3969_s18 = inlined_call_operand.hbm [shape: f32[128,128], index: 18, kind: input, shape index: {}]   ;;  %s3970_s19 = inlined_call_operand.vmem [shape: f32[1,128], index: 19, kind: input, shape index: {}]   ;;  %s3971_s20 = inlined_call_operand.hbm [shape: f32[1,128], index: 20, kind: output, shape index: {}]  }
   0x1   :  { %3977 = sst [smem:[#allocation24_spill]] %s3951_s0 }
   0x2   :  { %3978 = sst [smem:[#allocation25_spill]] %s3952_s1 }
   0x3   :  { %3979 = sst [smem:[#allocation26_spill]] %s3953_s2 }
   0x4   :  { %3980 = sst [smem:[#allocation27_spill]] %s3954_s3 }
   0x5   :  { %3981 = sst [smem:[#allocation28_spill]] %s3955_s4 }
   0x6   :  { %25 = vsyncpa [#allocation3], 0 }
   0x7   :  { %26 = vsyncpa [#allocation6], 0 }
   0x8   :  { %27 = vsyncpa [#allocation9], 0 }
   0x9   :  { %28 = vsyncpa [#allocation12], 0 }
   0xa   :  { %29 = vsyncpa [#allocation15], 0 }
   0xb   :  { %30 = vsyncpa [#allocation4], 0  ;;  %s3390_s1 = smov [#allocation5]   ;;  %s3158_s2 = scalar_lea.hbm %s3957_s6, 4096 }
   0xc   :  { %s58_s22 = sshll.u32 %s3390_s1, 4  ;;  %p3159_p0 = scmp.ne.s32.totalorder %s3957_s6, %s3158_s2  ;;  %s59_s22 = int_to_ptr.vmem [resolvable:$true] %s58_s22 }
   0xd   :  { %p3162_p1 = scmp.lt.u32.totalorder %s3158_s2, %s3957_s6 }
   0xf   :  { %p3164_p2 = pnand %p3162_p1, %p3159_p0 }
  0x11   :  { %3167 = shalt.err (!%p3164_p2)
}
  0x12   :  { %s3168_s28 = scalar_lea.vmem %s59_s22, 4096  ;;  %p3173_p4 = scmp.lt.s32.totalorder %s59_s22, %s59_s22 }
  0x13   :  { %p3169_p3 = scmp.ne.s32.totalorder %s59_s22, %s3168_s28  ;;  %p3174_p5 = scmp.lt.s32.totalorder %s3168_s28, %s3168_s28 }
  0x15   :  { %p3175_p6 = por %p3174_p5, %p3173_p4 }
  0x17   :  { %p3176_p7 = pnand %p3175_p6, %p3169_p3 }
  0x19   :  { %3179 = shalt.err (!%p3176_p7)
}
  0x1a   :  { %s3973_s4 = smov 128   ;;  %s3975_s29 = smov 8  }
  0x1b   :  { %64 = dma.hbm_to_vmem [thread:$0]  %s3957_s6, 4096, %s59_s22, [#allocation6], %s3973_s4, %s3973_s4, %s3975_s29  }
  0x1c   :  { %s3393_s21 = smov [#allocation8]   ;;  %s3180_s2 = scalar_lea.hbm %s3961_s10, 8192 }
  0x1d   :  { %s86_s1 = sshll.u32 %s3393_s21, 4  ;;  %p3181_p8 = scmp.ne.s32.totalorder %s3961_s10, %s3180_s2  ;;  %s87_s1 = int_to_ptr.vmem [resolvable:$true] %s86_s1 }
  0x1e   :  { %p3184_p9 = scmp.lt.u32.totalorder %s3180_s2, %s3961_s10 }
  0x20   :  { %p3186_p10 = pnand %p3184_p9, %p3181_p8 }
  0x22   :  { %3189 = shalt.err (!%p3186_p10)
}
  0x23   :  { %s3190_s28 = scalar_lea.vmem %s87_s1, 8192  ;;  %p3195_p12 = scmp.lt.s32.totalorder %s87_s1, %s87_s1 }
  0x24   :  { %p3191_p11 = scmp.ne.s32.totalorder %s87_s1, %s3190_s28  ;;  %p3196_p13 = scmp.lt.s32.totalorder %s3190_s28, %s3190_s28 }
  0x26   :  { %p3197_p0 = por %p3196_p13, %p3195_p12 }
  0x28   :  { %p3198_p1 = pnand %p3197_p0, %p3191_p11 }
  0x2a   :  { %3201 = shalt.err (!%p3198_p1)
}
  0x2b   :  { %s3394_s6 = smov 256   ;;  %s3395_s22 = smov 16  }
  0x2c   :  { %92 = dma.hbm_to_vmem [thread:$0]  %s3961_s10, 8192, %s87_s1, [#allocation9], %s3394_s6, %s3394_s6, %s3395_s22  }
  0x2d   :  { %s3396_s21 = smov [#allocation11]   ;;  %s3397_s24 = smov [#allocation14]  }
  0x2e   :  { %s114_s23 = sshll.u32 %s3396_s21, 4  ;;  %s141_s2 = sshll.u32 %s3397_s24, 4  ;;  %s115_s23 = int_to_ptr.vmem [resolvable:$true] %s114_s23  ;;  %s142_s2 = int_to_ptr.vmem [resolvable:$true] %s141_s2 }
  0x2f   :  { %s3202_s26 = scalar_lea.hbm %s3965_s14, 32 }
  0x30   :  { %p3203_p2 = scmp.ne.s32.totalorder %s3965_s14, %s3202_s26  ;;  %p3206_p3 = scmp.lt.u32.totalorder %s3202_s26, %s3965_s14 }
  0x32   :  { %p3208_p4 = pnand %p3206_p3, %p3203_p2 }
  0x34   :  { %3211 = shalt.err (!%p3208_p4)
}
  0x35   :  { %s3212_s10 = scalar_lea.vmem %s115_s23, 32  ;;  %p3217_p6 = scmp.lt.s32.totalorder %s115_s23, %s115_s23 }
  0x36   :  { %p3213_p5 = scmp.ne.s32.totalorder %s115_s23, %s3212_s10  ;;  %p3218_p7 = scmp.lt.s32.totalorder %s3212_s10, %s3212_s10 }
  0x38   :  { %p3219_p8 = por %p3218_p7, %p3217_p6 }
  0x3a   :  { %p3220_p9 = pnand %p3219_p8, %p3213_p5 }
  0x3c   :  { %3223 = shalt.err (!%p3220_p9)
}
  0x3d   :  { %s3398_s1 = smov 1   ;;  %s3224_s0 = scalar_lea.hbm %s3968_s17, 16 }
  0x3e   :  { %120 = dma.hbm_to_vmem [thread:$0]  %s3965_s14, 32, %s115_s23, [#allocation12], %s3395_s22, %s3395_s22, %s3398_s1  }
  0x3f   :  { %p3225_p10 = scmp.ne.s32.totalorder %s3968_s17, %s3224_s0  ;;  %p3228_p11 = scmp.lt.u32.totalorder %s3224_s0, %s3968_s17 }
  0x41   :  { %p3230_p12 = pnand %p3228_p11, %p3225_p10 }
  0x43   :  { %3233 = shalt.err (!%p3230_p12)
}
  0x44   :  { %s3234_s26 = scalar_lea.vmem %s142_s2, 16  ;;  %s3238_s27 = scalar_lea.vmem %s142_s2, 32 }
  0x45   :  { %p3235_p13 = scmp.ne.s32.totalorder %s142_s2, %s3234_s26  ;;  %p3239_p0 = scmp.lt.s32.totalorder %s142_s2, %s142_s2 }
  0x46   :  { %p3240_p1 = scmp.lt.s32.totalorder %s3238_s27, %s3234_s26 }
  0x48   :  { %p3241_p2 = por %p3240_p1, %p3239_p0 }
  0x4a   :  { %p3242_p3 = pnand %p3241_p2, %p3235_p13 }
  0x4c   :  { %3245 = shalt.err (!%p3242_p3)
}
  0x4d   :  { %144 = dma.hbm_to_vmem [thread:$0]  %s3968_s17, 16, %s142_s2, [#allocation15]  }
  0x4e   :  { %s3399_s28 = smov [#allocation2]   ;;  %s3982_s4 = sld [smem:[#allocation28_spill]] }
  0x4f   :  { %s44_s10 = sshll.u32 %s3399_s28, 4  ;;  %s45_s10 = int_to_ptr.vmem [resolvable:$true] %s44_s10 }
  0x54   :  { %s3246_s29 = scalar_lea.hbm %s3982_s4, 12288 }
  0x55   :  { %p3247_p4 = scmp.ne.s32.totalorder %s3982_s4, %s3246_s29  ;;  %p3250_p5 = scmp.lt.u32.totalorder %s3246_s29, %s3982_s4 }
  0x57   :  { %p3252_p6 = pnand %p3250_p5, %p3247_p4 }
  0x59   :  { %3255 = shalt.err (!%p3252_p6)
}
  0x5a   :  { %s3256_s3 = scalar_lea.vmem %s45_s10, 12288  ;;  %p3261_p8 = scmp.lt.s32.totalorder %s45_s10, %s45_s10 }
  0x5b   :  { %p3257_p7 = scmp.ne.s32.totalorder %s45_s10, %s3256_s3  ;;  %p3262_p9 = scmp.lt.s32.totalorder %s3256_s3, %s3256_s3 }
  0x5d   :  { %p3263_p10 = por %p3262_p9, %p3261_p8 }
  0x5f   :  { %p3264_p11 = pnand %p3263_p10, %p3257_p7 }
  0x61   :  { %3267 = shalt.err (!%p3264_p11)
}
  0x62   :  { %s3400_s17 = smov 384   ;;  %s3401_s2 = smov 24  }
  0x63   :  { %50 = dma.hbm_to_vmem [thread:$0]  %s3982_s4, 12288, %s45_s10, [#allocation3], %s3400_s17, %s3400_s17, %s3401_s2  }
  0x64   :  { %s3402_s14 = smov [#allocation7]   ;;  %s3403_s28 = smov [#allocation10]  }
  0x65   :  { %s72_s23 = sshll.u32 %s3402_s14, 4  ;;  %s100_s6 = sshll.u32 %s3403_s28, 4  ;;  %s73_s23 = int_to_ptr.vmem [resolvable:$true] %s72_s23  ;;  %s3583_s6 = int_to_ptr.vmem [resolvable:$true] %s100_s6 }
  0x66   :  { %s3268_s0 = scalar_lea.hbm %s3959_s8, 32 }
  0x67   :  { %p3269_p12 = scmp.ne.s32.totalorder %s3959_s8, %s3268_s0  ;;  %p3272_p13 = scmp.lt.u32.totalorder %s3268_s0, %s3959_s8 }
  0x69   :  { %p3274_p0 = pnand %p3272_p13, %p3269_p12 }
  0x6b   :  { %3277 = shalt.err (!%p3274_p0)
}
  0x6c   :  { %s3278_s10 = scalar_lea.vmem %s73_s23, 32  ;;  %p3283_p2 = scmp.lt.s32.totalorder %s73_s23, %s73_s23 }
  0x6d   :  { %p3279_p1 = scmp.ne.s32.totalorder %s73_s23, %s3278_s10  ;;  %p3284_p3 = scmp.lt.s32.totalorder %s3278_s10, %s3278_s10 }
  0x6f   :  { %p3285_p4 = por %p3284_p3, %p3283_p2 }
  0x71   :  { %p3286_p5 = pnand %p3285_p4, %p3279_p1 }
  0x73   :  { %3289 = shalt.err (!%p3286_p5)
}
  0x74   :  { %78 = dma.hbm_to_vmem [thread:$0]  %s3959_s8, 32, %s73_s23, [#allocation6], %s3395_s22, %s3395_s22, %s3398_s1  }
  0x75   :  { %s3290_s27 = scalar_lea.hbm %s3963_s12, 8192 }
  0x76   :  { %p3291_p6 = scmp.ne.s32.totalorder %s3963_s12, %s3290_s27  ;;  %p3294_p7 = scmp.lt.u32.totalorder %s3290_s27, %s3963_s12 }
  0x78   :  { %p3296_p8 = pnand %p3294_p7, %p3291_p6 }
  0x7a   :  { %3299 = shalt.err (!%p3296_p8)
}
  0x7b   :  { %s3300_s0 = scalar_lea.vmem %s3583_s6, 8192  ;;  %p3305_p10 = scmp.lt.s32.totalorder %s3583_s6, %s3583_s6 }
  0x7c   :  { %p3301_p9 = scmp.ne.s32.totalorder %s3583_s6, %s3300_s0  ;;  %p3306_p11 = scmp.lt.s32.totalorder %s3300_s0, %s3300_s0 }
  0x7e   :  { %p3307_p12 = por %p3306_p11, %p3305_p10 }
  0x80   :  { %p3308_p13 = pnand %p3307_p12, %p3301_p9 }
  0x82   :  { %3311 = shalt.err (!%p3308_p13)
}
  0x83   :  { %s3983_s8 = smov 8   ;;  %s3984_s23 = smov 128  }
  0x84   :  { %106 = dma.hbm_to_vmem [thread:$0]  %s3963_s12, 8192, %s3583_s6, [#allocation9], %s3984_s23, %s3984_s23, %s3983_s8  }
  0x85   :  { %s3404_s25 = smov [#allocation13]   ;;  %s3405_s10 = smov [#allocation16]  }
  0x86   :  { %s126_s3 = sshll.u32 %s3404_s25, 4  ;;  %s150_s4 = sshll.u32 %s3405_s10, 4  ;;  %s127_s3 = int_to_ptr.vmem [resolvable:$true] %s126_s3  ;;  %s3620_s4 = int_to_ptr.vmem [resolvable:$true] %s150_s4 }
  0x87   :  { %s3312_s26 = scalar_lea.hbm %s3966_s15, 32 }
  0x88   :  { %p3313_p0 = scmp.ne.s32.totalorder %s3966_s15, %s3312_s26  ;;  %p3316_p1 = scmp.lt.u32.totalorder %s3312_s26, %s3966_s15 }
  0x8a   :  { %p3318_p2 = pnand %p3316_p1, %p3313_p0 }
  0x8c   :  { %3321 = shalt.err (!%p3318_p2)
}
  0x8d   :  { %s3322_s12 = scalar_lea.vmem %s127_s3, 32  ;;  %p3327_p4 = scmp.lt.s32.totalorder %s127_s3, %s127_s3 }
  0x8e   :  { %p3323_p3 = scmp.ne.s32.totalorder %s127_s3, %s3322_s12  ;;  %p3328_p5 = scmp.lt.s32.totalorder %s3322_s12, %s3322_s12 }
  0x90   :  { %p3329_p6 = por %p3328_p5, %p3327_p4 }
  0x92   :  { %p3330_p7 = pnand %p3329_p6, %p3323_p3 }
  0x94   :  { %3333 = shalt.err (!%p3330_p7)
}
  0x95   :  { %132 = dma.hbm_to_vmem [thread:$0]  %s3966_s15, 32, %s127_s3, [#allocation12], %s3395_s22, %s3395_s22, %s3398_s1  }
  0x96   :  { %s3334_s24 = scalar_lea.hbm %s3969_s18, 2048 }
  0x97   :  { %p3335_p8 = scmp.ne.s32.totalorder %s3969_s18, %s3334_s24  ;;  %p3338_p9 = scmp.lt.u32.totalorder %s3334_s24, %s3969_s18 }
  0x99   :  { %p3340_p10 = pnand %p3338_p9, %p3335_p8 }
  0x9b   :  { %3343 = shalt.err (!%p3340_p10)
}
  0x9c   :  { %s3344_s26 = scalar_lea.vmem %s3620_s4, 2048  ;;  %p3349_p12 = scmp.lt.s32.totalorder %s3620_s4, %s3620_s4 }
  0x9d   :  { %p3345_p11 = scmp.ne.s32.totalorder %s3620_s4, %s3344_s26  ;;  %p3350_p13 = scmp.lt.s32.totalorder %s3344_s26, %s3344_s26 }
  0x9f   :  { %p3351_p0 = por %p3350_p13, %p3349_p12 }
  0xa1   :  { %p3352_p1 = pnand %p3351_p0, %p3345_p11 }
  0xa3   :  { %3355 = shalt.err (!%p3352_p1)
}
  0xa4   :  { %156 = dma.hbm_to_vmem [thread:$0]  %s3969_s18, 2048, %s3620_s4, [#allocation15], %s3984_s23, %s3984_s23, %s3983_s8  }
  0xa5   :  { %3378 = dma.done.wait [#allocation3], 12288  }
  0xa6   :  { %3379 = vsyncadd [#allocation3], 4294955008 }
  0xa7   :  { %3380 = dma.done.wait [#allocation6], 4128  }
  0xa8   :  { %3381 = vsyncadd [#allocation6], 4294963168 }
  0xa9   :  { %3382 = dma.done.wait [#allocation9], 16384  }
  0xaa   :  { %3383 = vsyncadd [#allocation9], 4294950912 }
  0xab   :  { %3384 = dma.done.wait [#allocation12], 64  }
  0xac   :  { %3385 = vsyncadd [#allocation12], 4294967232 }
  0xad   :  { %3386 = dma.done.wait [#allocation15], 2064  }
  0xae   :  { %3387 = vsyncadd [#allocation15], 4294965232  ;;  %s3985_s27 = sld [smem:[#allocation24_spill]]  ;;  %v217_v1 = vld [vmem:[#allocation2 + $0x8] sm:$0xff]  ;;  %v220_v2 = vld [vmem:[#allocation2 + $0x20] sm:$0xff]  ;;  %v3406_v5 = vmov 0.0|0.0  }
  0xaf   :  { %v216_v3 = vld [vmem:[#allocation2] sm:$0xff]  ;;  %v2761_v4 = vpack.c.bf16 %v220_v2, %v217_v1  ;;  %2793 = vmatprep.subr.bf16.mxu1 %v3406_v5  ;;  %v219_v6 = vld [vmem:[#allocation2 + $0x18] sm:$0xff]  ;;  %v218_v7 = vld [vmem:[#allocation2 + $0x10] sm:$0xff]  ;;  %v3407_v57 = vmov 0.0   ;;  %vm3408_vm0 = vmmov 0   ;;  %s3986_s23 = sld [smem:[#allocation26_spill]] }
  0xb0   :  { %v221_v8 = vld [vmem:[#allocation2 + $0x28] sm:$0xff]  ;;  %v2763_v9 = vpack.c.bf16 %v219_v6, %v216_v3  ;;  %v223_v11 = vld [vmem:[#allocation2 + $0x38] sm:$0xff]  ;;  %v226_v12 = vld [vmem:[#allocation2 + $0x50] sm:$0xff]  ;;  %345 = vmatprep.mubr.f32.mxu0 %v3407_v57  ;;  %2543 = vmatprep.mubr.msk.f32.mxu1 %vm3408_vm0, %v3407_v57  ;;  %s3987_s28 = sld [smem:[#allocation27_spill]]  ;;  %vm422_vm1 = vcmask 523264   ;;  %s3409_s6 = smov 64  }
  0xb1   :  { %v2794_v10 = vpack.c.bf16 %v221_v8, %v218_v7  ;;  %v222_v13 = vld [vmem:[#allocation2 + $0x30] sm:$0xff]  ;;  %2762 = vmatprep.subr.bf16.mxu0 %v2761_v4  ;;  %v2765_v14 = vpack.c.bf16 %v226_v12, %v223_v11  ;;  %v225_v15 = vld [vmem:[#allocation2 + $0x48] sm:$0xff]  ;;  %v224_v16 = vld [vmem:[#allocation2 + $0x40] sm:$0xff]  ;;  %s3988_s21 = sld [smem:[#allocation25_spill]]  ;;  %vm507_vm2 = vcmask 64512   ;;  %vm2259_vm3 = vcmask 1040384  }
  0xb2   :  { %v227_v17 = vld [vmem:[#allocation2 + $0x58] sm:$0xff]  ;;  %2764 = vmatpush1.bf16.msra.mxu0 %v2763_v9  ;;  %v2767_v18 = vpack.c.bf16 %v225_v15, %v222_v13  ;;  %v229_v20 = vld [vmem:[#allocation2 + $0x68] sm:$0xff]  ;;  %v232_v21 = vld [vmem:[#allocation2 + $0x80] sm:$0xff] }
  0xb3   :  { %2795 = vmatpush3.bf16.msra.mxu1 %v2794_v10  ;;  %v2797_v19 = vpack.c.bf16 %v227_v17, %v224_v16  ;;  %v228_v22 = vld [vmem:[#allocation2 + $0x60] sm:$0xff]  ;;  %2766 = vmatprep.subr.bf16.mxu0 %v2765_v14  ;;  %v2769_v23 = vpack.c.bf16 %v232_v21, %v229_v20  ;;  %v231_v24 = vld [vmem:[#allocation2 + $0x78] sm:$0xff]  ;;  %v230_v25 = vld [vmem:[#allocation2 + $0x70] sm:$0xff] }
  0xb4   :  { %v186_v0 = vld [vmem:[%s3985_s27] sm:$0xff]  ;;  %2796 = vmatprep.subr.bf16.mxu1 %v3406_v5  ;;  %v233_v26 = vld [vmem:[#allocation2 + $0x88] sm:$0xff]  ;;  %v2771_v27 = vpack.c.bf16 %v231_v24, %v228_v22  ;;  %v235_v33 = vld [vmem:[#allocation2 + $0x98] sm:$0xff] }
  0xb5   :  { %189 = vadd.xlane.f32.xlu0 %v186_v0  ;;  %v2800_v28 = vpack.c.bf16 %v233_v26, %v230_v25  ;;  %v238_v34 = vld [vmem:[#allocation2 + $0xb0] sm:$0xff]  ;;  %v237_v37 = vld [vmem:[#allocation2 + $0xa8] sm:$0xff]  ;;  %v236_v38 = vld [vmem:[#allocation2 + $0xa0] sm:$0xff]  ;;  %v266_v25 = vlaneseq }
  0xb6   :  { %2768 = vmatpush1.bf16.msra.mxu0 %v2767_v18  ;;  %v2773_v35 = vpack.c.bf16 %v238_v34, %v235_v33  ;;  %v234_v36 = vld [vmem:[#allocation2 + $0x90] sm:$0xff]  ;;  %v239_v40 = vld [vmem:[#allocation2 + $0xb8] sm:$0xff]  ;;  %v241_v42 = vld [vmem:[#allocation2 + $0xc8] sm:$0xff] }
  0xb7   :  { %2798 = vmatpush3.bf16.msra.mxu1 %v2797_v19  ;;  %2770 = vmatprep.subr.bf16.mxu0 %v2769_v23  ;;  %v2775_v39 = vpack.c.bf16 %v237_v37, %v234_v36  ;;  %v2803_v41 = vpack.c.bf16 %v239_v40, %v236_v38  ;;  %v244_v43 = vld [vmem:[#allocation2 + $0xe0] sm:$0xff]  ;;  %v243_v46 = vld [vmem:[#allocation2 + $0xd8] sm:$0xff]  ;;  %v242_v47 = vld [vmem:[#allocation2 + $0xd0] sm:$0xff]  ;;  %v3690_v26 = vshrl.u32 %v266_v25, 7 }
  0xb8   :  { %2799 = vmatprep.subr.bf16.mxu1 %v3406_v5  ;;  %v2777_v44 = vpack.c.bf16 %v244_v43, %v241_v42  ;;  %v240_v45 = vld [vmem:[#allocation2 + $0xc0] sm:$0xff]  ;;  %v245_v49 = vld [vmem:[#allocation2 + $0xe8] sm:$0xff]  ;;  %v247_v50 = vld [vmem:[#allocation2 + $0xf8] sm:$0xff] }
  0xb9   :  { %v2779_v48 = vpack.c.bf16 %v243_v46, %v240_v45  ;;  %v250_v51 = vld [vmem:[#allocation2 + $0x110] sm:$0xff]  ;;  %v2806_v52 = vpack.c.bf16 %v245_v49, %v242_v47  ;;  %v249_v55 = vld [vmem:[#allocation2 + $0x108] sm:$0xff]  ;;  %v248_v56 = vld [vmem:[#allocation2 + $0x100] sm:$0xff] }
  0xba   :  { %2772 = vmatpush1.bf16.msra.mxu0 %v2771_v27  ;;  %v2781_v53 = vpack.c.bf16 %v250_v51, %v247_v50  ;;  %v246_v54 = vld [vmem:[#allocation2 + $0xf0] sm:$0xff]  ;;  %v251_v59 = vld [vmem:[#allocation2 + $0x118] sm:$0xff]  ;;  %v253_v60 = vld [vmem:[#allocation2 + $0x128] sm:$0xff]  ;;  %v3693_v27 = vsub.s32 1, %v3690_v26 }
  0xbb   :  { %2801 = vmatpush3.bf16.msra.mxu1 %v2800_v28  ;;  %2774 = vmatprep.subr.bf16.mxu0 %v2773_v35  ;;  %v2783_v58 = vpack.c.bf16 %v249_v55, %v246_v54  ;;  %v256_v61 = vld [vmem:[#allocation2 + $0x140] sm:$0xff]  ;;  %v2809_v62 = vpack.c.bf16 %v251_v59, %v248_v56  ;;  %v255_v1 = vld [vmem:[#allocation2 + $0x138] sm:$0xff]  ;;  %v254_v2 = vld [vmem:[#allocation2 + $0x130] sm:$0xff] }
  0xbc   :  { %2802 = vmatprep.subr.bf16.mxu1 %v3406_v5  ;;  %v2785_v63 = vpack.c.bf16 %v256_v61, %v253_v60  ;;  %v257_v3 = vld [vmem:[#allocation2 + $0x148] sm:$0xff]  ;;  %v259_v4 = vld [vmem:[#allocation2 + $0x158] sm:$0xff]  ;;  %v262_v6 = vld [vmem:[#allocation2 + $0x170] sm:$0xff] }
  0xbd   :  { %v2812_v8 = vpack.c.bf16 %v257_v3, %v254_v2  ;;  %v2789_v9 = vpack.c.bf16 %v262_v6, %v259_v4  ;;  %v258_v10 = vld [vmem:[#allocation2 + $0x150] sm:$0xff]  ;;  %v261_v11 = vld [vmem:[#allocation2 + $0x168] sm:$0xff]  ;;  %v260_v12 = vld [vmem:[#allocation2 + $0x160] sm:$0xff] }
  0xbe   :  { %2776 = vmatpush1.bf16.msra.mxu0 %v2775_v39  ;;  %v263_v13 = vld [vmem:[#allocation2 + $0x178] sm:$0xff]  ;;  %v2791_v14 = vpack.c.bf16 %v261_v11, %v258_v10  ;;  %v2291_v20 = vld [vmem:[%s3986_s23] ss:$0 sm:$0xff]  ;;  %v774_v25 = vld [vmem:[#allocation5 + $0x48] sm:$0xff] }
  0xbf   :  { %2804 = vmatpush3.bf16.msra.mxu1 %v2803_v41  ;;  %2778 = vmatprep.subr.bf16.mxu0 %v2777_v44  ;;  %v2815_v15 = vpack.c.bf16 %v263_v13, %v260_v12  ;;  %v2292_v22 = vld [vmem:[%s3987_s28] ss:$0 sm:$0xff]  ;;  %v766_v12 = vld [vmem:[#allocation5 + $0x8] sm:$0xff]  ;;  %v767_v13 = vld [vmem:[#allocation5 + $0x10] sm:$0xff] }
  0xc0   :  { %2805 = vmatprep.subr.bf16.mxu1 %v3406_v5  ;;  %v264_v28 = vld [vmem:[%s3956_s5] sm:$0x7] }
  0xc1   :  { %v3716_v42 = vld [vmem:[%s3988_s21] ss:$0 sm:$0xff] }
  0xc2   :  { %2780 = vmatpush1.bf16.msra.mxu0 %v2779_v48  ;;  %v765_v11 = vld [vmem:[#allocation5] sm:$0xff] }
  0xc3   :  { %2807 = vmatpush3.bf16.msra.mxu1 %v2806_v52  ;;  %2782 = vmatprep.subr.bf16.mxu0 %v2781_v53 }
  0xc4   :  { %2808 = vmatprep.subr.bf16.mxu1 %v3406_v5 }
  0xc6   :  { %2784 = vmatpush1.bf16.msra.mxu0 %v2783_v58 }
  0xc7   :  { %2810 = vmatpush3.bf16.msra.mxu1 %v2809_v62  ;;  %2786 = vmatprep.subr.bf16.mxu0 %v2785_v63 }
  0xc8   :  { %2811 = vmatprep.subr.bf16.mxu1 %v3406_v5 }
  0xcb   :  { %2813 = vmatpush3.bf16.msra.mxu1 %v2812_v8 }
  0xcc   :  { %2814 = vmatprep.subr.bf16.mxu1 %v3406_v5 }
  0xcf   :  { %2816 = vmatpush3.bf16.msra.mxu1 %v2815_v15  ;;  %v768_v15 = vld [vmem:[#allocation5 + $0x18] sm:$0xff] }
 0x142   :  { %v190_v29 = vpop.xlane.xlu0 %189 }
 0x143   :  { %v192_v30 = vmul.f32 0.0078125, %v190_v29  ;;  %v3699_v29 = vsub.s32 0, %v3690_v26 }
 0x145   :  { %v3664_v31 = vsub.f32 %v186_v0, %v192_v30  ;;  %v252_v0 = vld [vmem:[#allocation2 + $0x120] sm:$0xff]  ;;  %v276_v30 = vsub.s32 2, %v3690_v26  ;;  %v269_v34 = vrot.slane %v264_v28, %v3699_v29 }
 0x146   :  { %v2787_v7 = vpack.c.bf16 %v255_v1, %v252_v0 }
 0x147   :  { %v194_v32 = vmul.f32 %v3664_v31, %v3664_v31  ;;  %v277_v37 = vrot.slane %v264_v28, %v276_v30 }
 0x148   :  { %2788 = vmatpush1.bf16.msra.mxu0 %v2787_v7 }
 0x149   :  { %195 = vadd.xlane.f32.xlu0 %v194_v32  ;;  %2790 = vmatprep.subr.bf16.mxu0 %v2789_v9 }
 0x14c   :  { %2792 = vmatpush1.bf16.msra.mxu0 %v2791_v14  ;;  %v2818_v14 = vpack.c.bf16 %v766_v12, %v765_v11  ;;  %v898_v12 = vld [vmem:[#allocation8 + $0x60] sm:$0xff] }
 0x14d   :  { %2546 = vmatprep.subr.mxu0 %v3407_v57 }
 0x1d6   :  { %v196_v16 = vpop.xlane.xlu0 %195 }
 0x1d7   :  { %v197_v17 = vmul.f32 0.0078125, %v196_v16  ;;  %v2821_v16 = vpack.c.bf16 %v768_v15, %v767_v13  ;;  %v900_v13 = vld [vmem:[#allocation8 + $0x70] sm:$0xff]  ;;  %v903_v15 = vld [vmem:[#allocation8 + $0x88] sm:$0xff] }
 0x1d9   :  { %v198_v18 = vadd.f32 1e-12, %v197_v17  ;;  %v769_v17 = vld [vmem:[#allocation5 + $0x20] sm:$0xff] }
 0x1db   :  { %3118 = vrsqrt.f32 %v198_v18  ;;  %v770_v18 = vld [vmem:[#allocation5 + $0x28] sm:$0xff] }
 0x1e5   :  { %v3119_v19 = vpop.eup %3118 }
 0x1e6   :  { %v200_v21 = vmul.f32 %v3119_v19, %v3664_v31  ;;  %v273_v31 = vrot.slane %v264_v28, %v3693_v27  ;;  %v2824_v19 = vpack.c.bf16 %v770_v18, %v769_v17  ;;  %v902_v18 = vld [vmem:[#allocation8 + $0x80] sm:$0xff] }
 0x1e8   :  { %v207_v23 = vmul.f32 %v2291_v20, %v200_v21  ;;  %v771_v20 = vld [vmem:[#allocation5 + $0x30] sm:$0xff]  ;;  %v772_v21 = vld [vmem:[#allocation5 + $0x38] sm:$0xff] }
 0x1ea   :  { %v3683_v24 = vadd.f32 %v2292_v22, %v207_v23  ;;  %v2827_v22 = vpack.c.bf16 %v772_v21, %v771_v20  ;;  %v773_v23 = vld [vmem:[#allocation5 + $0x40] sm:$0xff]  ;;  %v907_v20 = vld [vmem:[#allocation8 + $0xa8] sm:$0xff] }
 0x1eb   :  { %v2830_v28 = vpack.c.bf16 %v774_v25, %v773_v23  ;;  %v906_v23 = vld [vmem:[#allocation8 + $0xa0] sm:$0xff]  ;;  %v908_v25 = vld [vmem:[#allocation8 + $0xb0] sm:$0xff] }
 0x1ec   :  { %346 = vmatmul.mubr.f32.vlgmr.msra.gmra.mrb[0].mxu0 %v3683_v24  ;;  %2544 = vmatmul.mubr.f32.vlgmr.msra.gmra.mrb[0].mxu1 %v3683_v24 }
 0x1ed   :  { %2548 = vmatprep.mubr.msk.f32.mxu0 %vm3408_vm0, %v3407_v57  ;;  %994 = vmatprep.mubr.f32.mxu1 %v3407_v57 }
 0x2bf   :  { %v347_v32 = vpop.f32.mrb[0].mxu0  ;;  %v418_v33 = vpop.f32.mrb[0].mxu1 }
 0x2c0   :  { %v349_v35 = vpop.f32.mrb[1].mxu0  ;;  %v2545_v36 = vpop.f32.mrb[1].mxu1  ;;  %v348_v39 = vadd.f32 %v347_v32, %v269_v34  ;;  %v419_v40 = vadd.f32 %v418_v33, %v277_v37  ;;  %v776_v32 = vld [vmem:[#allocation5 + $0x58] sm:$0xff]  ;;  %v777_v34 = vld [vmem:[#allocation5 + $0x60] sm:$0xff]  ;;  %v779_v37 = vld [vmem:[#allocation5 + $0x70] sm:$0xff] }
 0x2c1   :  { %v350_v38 = vadd.f32 %v349_v35, %v273_v31  ;;  %v775_v31 = vld [vmem:[#allocation5 + $0x50] sm:$0xff]  ;;  %v778_v35 = vld [vmem:[#allocation5 + $0x68] sm:$0xff] }
 0x2c2   :  { %v2833_v33 = vpack.c.bf16 %v776_v32, %v775_v31  ;;  %v2836_v36 = vpack.c.bf16 %v778_v35, %v777_v34  ;;  %v911_v31 = vld [vmem:[#allocation8 + $0xc8] sm:$0xff]  ;;  %v913_v32 = vld [vmem:[#allocation8 + $0xd8] sm:$0xff]  ;;  %v910_v35 = vld [vmem:[#allocation8 + $0xc0] sm:$0xff] }
 0x2c3   :  { %594 = vrot.lane.b32.xlu0 %v350_v38, %s3409_s6  ;;  %2547 = vmatpush3.xpose.msk.msra.mxu0 %vm422_vm1, %v350_v38  ;;  %v780_v38 = vld [vmem:[#allocation5 + $0x78] sm:$0xff]  ;;  %v2865_v34 = vpack.c.bf16 %v913_v32, %v911_v31  ;;  %v1039_v32 = vld [vmem:[#allocation10 + $0xe0] sm:$0xff] }
 0x2c4   :  { %2551 = vmatprep.subr.mxu0 %v3407_v57 }
 0x2c6   :  { %2549 = vmatmul.mubr.msk.f32.vlgmr.msra.gmra.mrb[2].mxu0 %vm422_vm1, %v348_v39 }
 0x2c7   :  { %2552 = vmatpush3.msra.mxu0 %v419_v40  ;;  %2553 = vmatprep.mubr.msk.f32.mxu0 %vm3408_vm0, %v3407_v57 }
 0x2c8   :  { %2556 = vmatprep.subr.mxu0 %v3407_v57 }
 0x335   :  { %v595_v55 = vpop.permute.xlu0 %594 }
 0x399   :  { %v495_v41 = vpop.f32.mrb[2].mxu0 }
 0x39a   :  { %v499_v43 = vmul.f32 0.125, %v495_v41  ;;  %v2550_v44 = vpop.f32.mrb[3].mxu0 }
 0x39c   :  { %v506_v45 = vadd.f32 %v3716_v42, %v499_v43 }
 0x39e   :  { %v508_v46 = vsel %vm507_vm2, %v506_v45, -inf }
 0x39f   :  { %509 = vmax.xlane.f32.xlu1 %v508_v46 }
 0x42c   :  { %v510_v47 = vpop.xlane.xlu1 %509 }
 0x42d   :  { %v511_v48 = vsub.f32 %v506_v45, %v510_v47  ;;  %v2300_v45 = vld [vmem:[%s3958_s7] ss:$0 sm:$0xff] }
 0x42f   :  { %v512_v49 = vmul.f32 1.442695, %v511_v48 }
 0x431   :  { %3120 = vpow2.f32 %v512_v49 }
 0x43b   :  { %v3121_v50 = vpop.eup %3120 }
 0x43c   :  { %v514_v51 = vsel %vm507_vm2, %v3121_v50, 0.0 }
 0x43d   :  { %515 = vadd.xlane.f32.xlu1 %v514_v51  ;;  %v889_v51 = vld [vmem:[#allocation8 + $0x18] sm:$0xff] }
 0x44e   :  { %592 = vrot.lane.b32.xlu1 %v348_v39, %s3409_s6  ;;  %v2839_v39 = vpack.c.bf16 %v780_v38, %v779_v37  ;;  %v915_v37 = vld [vmem:[#allocation8 + $0xe8] sm:$0xff]  ;;  %v917_v38 = vld [vmem:[#allocation8 + $0xf8] sm:$0xff] }
 0x4ca   :  { %v516_v52 = vpop.xlane.xlu1 %515 }
 0x4cb   :  { %3122 = vrcp.f32 %v516_v52  ;;  %v886_v52 = vld [vmem:[#allocation8] sm:$0xff] }
 0x4ce   :  { %v593_v56 = vpop.permute.xlu1 %592 }
 0x4d5   :  { %v3123_v53 = vpop.eup %3122 }
 0x4d6   :  { %v518_v54 = vmul.f32 %v3123_v53, %v3121_v50  ;;  %v887_v50 = vld [vmem:[#allocation8 + $0x8] sm:$0xff] }
 0x4d7   :  { %v2841_v53 = vpack.c.bf16 %v889_v51, %v887_v50  ;;  %v1029_v50 = vld [vmem:[#allocation10 + $0x90] sm:$0xff]  ;;  %v1030_v51 = vld [vmem:[#allocation10 + $0x98] sm:$0xff] }
 0x4d8   :  { %2554 = vmatmul.mubr.msk.f32.vlgmr.msra.gmra.mrb[4].mxu0 %vm507_vm2, %v518_v54  ;;  %v888_v54 = vld [vmem:[#allocation8 + $0x10] sm:$0xff] }
 0x4d9   :  { %2557 = vmatpush3.xpose.msk.msra.mxu0 %vm422_vm1, %v595_v55  ;;  %2558 = vmatprep.mubr.msk.f32.mxu0 %vm3408_vm0, %v3407_v57  ;;  %v891_v55 = vld [vmem:[#allocation8 + $0x28] sm:$0xff] }
 0x4da   :  { %2561 = vmatprep.subr.mxu0 %v3407_v57  ;;  %2842 = vmatprep.subr.bf16.mxu1 %v2841_v53  ;;  %v2877_v53 = vpack.c.bf16 %v1030_v51, %v1029_v50 }
 0x4dc   :  { %2559 = vmatmul.mubr.msk.f32.vlgmr.msra.gmra.mrb[6].mxu0 %vm422_vm1, %v593_v56  ;;  %v893_v56 = vld [vmem:[#allocation8 + $0x38] sm:$0xff] }
 0x4dd   :  { %2563 = vmatprep.mubr.msk.f32.mxu0 %vm3408_vm0, %v3407_v57 }
 0x5ab   :  { %v3730_v58 = vpop.f32.mrb[4].mxu0 }
 0x5ac   :  { %v2555_v59 = vpop.f32.mrb[5].mxu0 }
 0x5ad   :  { %v2843_v59 = vpack.c.bf16 %v888_v54, %v886_v52  ;;  %v1013_v54 = vld [vmem:[#allocation10 + $0x10] sm:$0xff] }
 0x5af   :  { %v666_v60 = vpop.f32.mrb[6].mxu0  ;;  %2844 = vmatpush1.bf16.msra.mxu1 %v2843_v59  ;;  %v1032_v59 = vld [vmem:[#allocation10 + $0xa8] sm:$0xff] }
 0x5b0   :  { %v670_v61 = vmul.f32 0.125, %v666_v60  ;;  %v2560_v62 = vpop.f32.mrb[7].mxu0  ;;  %v890_v60 = vld [vmem:[#allocation8 + $0x20] sm:$0xff] }
 0x5b1   :  { %v895_v62 = vld [vmem:[#allocation8 + $0x48] sm:$0xff] }
 0x5b2   :  { %v671_v63 = vadd.f32 %v3716_v42, %v670_v61  ;;  %v892_v61 = vld [vmem:[#allocation8 + $0x30] sm:$0xff] }
 0x5b4   :  { %v672_v0 = vsel %vm507_vm2, %v671_v63, -inf }
 0x5b5   :  { %673 = vmax.xlane.f32.xlu1 %v672_v0  ;;  %v2847_v0 = vpack.c.bf16 %v892_v61, %v890_v60  ;;  %v1015_v61 = vld [vmem:[#allocation10 + $0x20] sm:$0xff] }
 0x642   :  { %v674_v1 = vpop.xlane.xlu1 %673 }
 0x643   :  { %v675_v2 = vsub.f32 %v671_v63, %v674_v1  ;;  %v897_v63 = vld [vmem:[#allocation8 + $0x58] sm:$0xff] }
 0x644   :  { %v2849_v1 = vpack.c.bf16 %v897_v63, %v895_v62  ;;  %v1016_v62 = vld [vmem:[#allocation10 + $0x28] sm:$0xff] }
 0x645   :  { %v676_v3 = vmul.f32 1.442695, %v675_v2  ;;  %v896_v2 = vld [vmem:[#allocation8 + $0x50] sm:$0xff]  ;;  %v2883_v63 = vpack.c.bf16 %v1016_v62, %v1015_v61 }
 0x647   :  { %3124 = vpow2.f32 %v676_v3 }
 0x651   :  { %v3125_v4 = vpop.eup %3124 }
 0x652   :  { %v678_v6 = vsel %vm507_vm2, %v3125_v4, 0.0 }
 0x653   :  { %679 = vadd.xlane.f32.xlu0 %v678_v6 }
 0x669   :  { %684 = vrot.lane.b32.xlu0 %v419_v40, %s3409_s6 }
 0x6e0   :  { %v680_v7 = vpop.xlane.xlu0 %679 }
 0x6e1   :  { %3126 = vrcp.f32 %v680_v7 }
 0x6e4   :  { %v685_v8 = vpop.permute.xlu0 %684 }
 0x6e5   :  { %2562 = vmatpush3.msra.mxu0 %v685_v8 }
 0x6e6   :  { %2817 = vmatprep.subr.bf16.mxu0 %v3406_v5 }
 0x6eb   :  { %v3127_v9 = vpop.eup %3126 }
 0x6ec   :  { %v682_v10 = vmul.f32 %v3127_v9, %v3125_v4  ;;  %v899_v9 = vld [vmem:[#allocation8 + $0x68] sm:$0xff] }
 0x6ee   :  { %2564 = vmatmul.mubr.msk.f32.vlgmr.msra.gmra.mrb[8].mxu0 %vm507_vm2, %v682_v10  ;;  %v901_v10 = vld [vmem:[#allocation8 + $0x78] sm:$0xff] }
 0x6ef   :  { %2598 = vmatprep.mubr.msk.f32.mxu0 %vm3408_vm0, %v3407_v57  ;;  %2819 = vmatpush3.bf16.msra.mxu0 %v2818_v14  ;;  %v2853_v11 = vpack.c.bf16 %v901_v10, %v899_v9  ;;  %v2855_v14 = vpack.c.bf16 %v900_v13, %v898_v12  ;;  %v1033_v10 = vld [vmem:[#allocation10 + $0xb0] sm:$0xff] }
 0x6f0   :  { %2820 = vmatprep.subr.bf16.mxu0 %v3406_v5  ;;  %v1017_v13 = vld [vmem:[#allocation10 + $0x30] sm:$0xff] }
 0x6f3   :  { %2822 = vmatpush3.bf16.msra.mxu0 %v2821_v16  ;;  %v905_v16 = vld [vmem:[#allocation8 + $0x98] sm:$0xff] }
 0x6f4   :  { %2823 = vmatprep.subr.bf16.mxu0 %v3406_v5  ;;  %v2857_v17 = vpack.c.bf16 %v905_v16, %v903_v15  ;;  %v1036_v16 = vld [vmem:[#allocation10 + $0xc8] sm:$0xff] }
 0x6f7   :  { %2825 = vmatpush3.bf16.msra.mxu0 %v2824_v19  ;;  %v904_v19 = vld [vmem:[#allocation8 + $0x90] sm:$0xff] }
 0x6f8   :  { %2826 = vmatprep.subr.bf16.mxu0 %v3406_v5  ;;  %v2859_v21 = vpack.c.bf16 %v904_v19, %v902_v18  ;;  %v1019_v18 = vld [vmem:[#allocation10 + $0x40] sm:$0xff]  ;;  %v1020_v19 = vld [vmem:[#allocation10 + $0x48] sm:$0xff] }
 0x6fb   :  { %2828 = vmatpush3.bf16.msra.mxu0 %v2827_v22  ;;  %v909_v22 = vld [vmem:[#allocation8 + $0xb8] sm:$0xff] }
 0x6fc   :  { %2829 = vmatprep.subr.bf16.mxu0 %v3406_v5 }
 0x6ff   :  { %2831 = vmatpush3.bf16.msra.mxu0 %v2830_v28  ;;  %v2861_v28 = vpack.c.bf16 %v909_v22, %v907_v20  ;;  %v2891_v20 = vpack.c.bf16 %v1020_v19, %v1019_v18  ;;  %v1038_v22 = vld [vmem:[#allocation10 + $0xd8] sm:$0xff]  ;;  %v1158_v19 = vld [vmem:[#allocation2 + $0x1c8] sm:$0xff] }
 0x700   :  { %2832 = vmatprep.subr.bf16.mxu0 %v3406_v5 }
 0x703   :  { %2834 = vmatpush3.bf16.msra.mxu0 %v2833_v33  ;;  %v2863_v33 = vpack.c.bf16 %v908_v25, %v906_v23  ;;  %v1021_v25 = vld [vmem:[#allocation10 + $0x50] sm:$0xff] }
 0x704   :  { %2835 = vmatprep.subr.bf16.mxu0 %v3406_v5 }
 0x707   :  { %2837 = vmatpush3.bf16.msra.mxu0 %v2836_v36  ;;  %v912_v36 = vld [vmem:[#allocation8 + $0xd0] sm:$0xff] }
 0x708   :  { %2838 = vmatprep.subr.bf16.mxu0 %v3406_v5 }
 0x70b   :  { %2840 = vmatpush3.bf16.msra.mxu0 %v2839_v39  ;;  %v2867_v39 = vpack.c.bf16 %v912_v36, %v910_v35  ;;  %v1023_v35 = vld [vmem:[#allocation10 + $0x60] sm:$0xff]  ;;  %v1024_v36 = vld [vmem:[#allocation10 + $0x68] sm:$0xff] }
 0x7c1   :  { %v756_v40 = vpop.f32.mrb[8].mxu0 }
 0x7c2   :  { %761 = vrot.lane.b32.xlu1 %v756_v40, %s3409_s6  ;;  %v2565_v41 = vpop.f32.mrb[9].mxu0  ;;  %v2869_v40 = vpack.c.bf16 %v917_v38, %v915_v37  ;;  %v2899_v37 = vpack.c.bf16 %v1024_v36, %v1023_v35  ;;  %v1041_v38 = vld [vmem:[#allocation10 + $0xf0] sm:$0xff] }
 0x7c3   :  { %v914_v41 = vld [vmem:[#allocation8 + $0xe0] sm:$0xff] }
 0x834   :  { %v762_v43 = vpop.permute.xlu1 %761 }
 0x835   :  { %v764_v44 = vsel %vm422_vm1, %v3730_v58, %v762_v43  ;;  %v2845_v58 = vpack.c.bf16 %v893_v56, %v891_v55  ;;  %v916_v43 = vld [vmem:[#allocation8 + $0xf0] sm:$0xff]  ;;  %v1014_v55 = vld [vmem:[#allocation10 + $0x18] sm:$0xff]  ;;  %v1031_v56 = vld [vmem:[#allocation10 + $0xa0] sm:$0xff] }
 0x836   :  { %2599 = vmatmul.mubr.f32.vlgmr.msra.gmra.mrb[10].mxu0 %v764_v44  ;;  %v2871_v44 = vpack.c.bf16 %v916_v43, %v914_v41  ;;  %v2881_v60 = vpack.c.bf16 %v1032_v59, %v1031_v56  ;;  %v1025_v41 = vld [vmem:[#allocation10 + $0x70] sm:$0xff]  ;;  %v1026_v43 = vld [vmem:[#allocation10 + $0x78] sm:$0xff] }
 0x837   :  { %2846 = vmatprep.subr.bf16.mxu1 %v2845_v58  ;;  %v2879_v58 = vpack.c.bf16 %v1014_v55, %v1013_v54 }
 0x838   :  { %2848 = vmatpush1.bf16.msra.mxu1 %v2847_v0 }
 0x839   :  { %2850 = vmatprep.subr.bf16.mxu1 %v2849_v1 }
 0x909   :  { %v854_v46 = vpop.f32.mrb[10].mxu0 }
 0x90a   :  { %v855_v47 = vadd.f32 %v2300_v45, %v854_v46  ;;  %v2600_v48 = vpop.f32.mrb[11].mxu0  ;;  %v1027_v45 = vld [vmem:[#allocation10 + $0x80] sm:$0xff]  ;;  %v1028_v46 = vld [vmem:[#allocation10 + $0x88] sm:$0xff] }
 0x90b   :  { %v2873_v48 = vpack.c.bf16 %v1028_v46, %v1027_v45  ;;  %v918_v45 = vld [vmem:[%s3962_s11] sm:$0x3] }
 0x90c   :  { %v858_v49 = vadd.f32 %v855_v47, %v3683_v24  ;;  %v894_v24 = vld [vmem:[#allocation8 + $0x40] sm:$0xff]  ;;  %v923_v46 = vrot.slane %v918_v45, %v3699_v29 }
 0x90d   :  { %v2851_v3 = vpack.c.bf16 %v896_v2, %v894_v24  ;;  %v1011_v47 = vld [vmem:[#allocation10] sm:$0xff]  ;;  %2874 = vmatprep.subr.bf16.mxu0 %v2873_v48 }
 0x90e   :  { %861 = vadd.xlane.f32.xlu1 %v858_v49 }
 0x90f   :  { %2852 = vmatpush1.bf16.msra.mxu1 %v2851_v3  ;;  %v2301_v3 = vld [vmem:[#allocation7] ss:$0 sm:$0xff] }
 0x910   :  { %2854 = vmatprep.subr.bf16.mxu1 %v2853_v11  ;;  %v1034_v11 = vld [vmem:[#allocation10 + $0xb8] sm:$0xff] }
 0x911   :  { %v2885_v12 = vpack.c.bf16 %v1034_v11, %v1033_v10  ;;  %v1152_v11 = vld [vmem:[#allocation2 + $0x198] sm:$0xff] }
 0x913   :  { %2856 = vmatpush1.bf16.msra.mxu1 %v2855_v14  ;;  %v1018_v14 = vld [vmem:[#allocation10 + $0x38] sm:$0xff] }
 0x914   :  { %2858 = vmatprep.subr.bf16.mxu1 %v2857_v17  ;;  %v2887_v15 = vpack.c.bf16 %v1018_v14, %v1017_v13  ;;  %v1154_v13 = vld [vmem:[#allocation2 + $0x1a8] sm:$0xff] }
 0x917   :  { %2860 = vmatpush1.bf16.msra.mxu1 %v2859_v21  ;;  %v1037_v21 = vld [vmem:[#allocation10 + $0xd0] sm:$0xff] }
 0x918   :  { %2862 = vmatprep.subr.bf16.mxu1 %v2861_v28  ;;  %v2893_v23 = vpack.c.bf16 %v1038_v22, %v1037_v21  ;;  %v1022_v28 = vld [vmem:[#allocation10 + $0x58] sm:$0xff] }
 0x919   :  { %v2895_v31 = vpack.c.bf16 %v1022_v28, %v1021_v25  ;;  %v1160_v21 = vld [vmem:[#allocation2 + $0x1d8] sm:$0xff]  ;;  %v1165_v25 = vld [vmem:[#allocation2 + $0x200] sm:$0xff] }
 0x91a   :  { %v1161_v28 = vld [vmem:[#allocation2 + $0x1e0] sm:$0xff] }
 0x91b   :  { %2864 = vmatpush1.bf16.msra.mxu1 %v2863_v33  ;;  %v1040_v33 = vld [vmem:[#allocation10 + $0xe8] sm:$0xff] }
 0x91c   :  { %2866 = vmatprep.subr.bf16.mxu1 %v2865_v34  ;;  %v2897_v34 = vpack.c.bf16 %v1040_v33, %v1039_v32  ;;  %v1164_v32 = vld [vmem:[#allocation2 + $0x1f8] sm:$0xff]  ;;  %v1163_v33 = vld [vmem:[#allocation2 + $0x1f0] sm:$0xff] }
 0x91d   :  { %v2915_v35 = vpack.c.bf16 %v1164_v32, %v1161_v28 }
 0x91f   :  { %2868 = vmatpush1.bf16.msra.mxu1 %v2867_v39  ;;  %v1042_v39 = vld [vmem:[#allocation10 + $0xf8] sm:$0xff] }
 0x920   :  { %2870 = vmatprep.subr.bf16.mxu1 %v2869_v40  ;;  %v2901_v40 = vpack.c.bf16 %v1042_v39, %v1041_v38 }
 0x923   :  { %2872 = vmatpush1.bf16.msra.mxu1 %v2871_v44  ;;  %v2903_v44 = vpack.c.bf16 %v1026_v43, %v1025_v41  ;;  %v1168_v41 = vld [vmem:[#allocation2 + $0x218] sm:$0xff]  ;;  %v1171_v43 = vld [vmem:[#allocation2 + $0x230] sm:$0xff] }
 0x99b   :  { %v862_v4 = vpop.xlane.xlu1 %861 }
 0x99c   :  { %v863_v6 = vmul.f32 0.0078125, %v862_v4 }
 0x99e   :  { %v3754_v7 = vsub.f32 %v858_v49, %v863_v6  ;;  %v1012_v49 = vld [vmem:[#allocation10 + $0x8] sm:$0xff]  ;;  %v2302_v6 = vld [vmem:[%s3960_s9] ss:$0 sm:$0xff] }
 0x99f   :  { %v2875_v52 = vpack.c.bf16 %v1012_v49, %v1011_v47  ;;  %v927_v47 = vrot.slane %v918_v45, %v3693_v27  ;;  %v1167_v45 = vld [vmem:[#allocation2 + $0x210] sm:$0xff] }
 0x9a0   :  { %v865_v8 = vmul.f32 %v3754_v7, %v3754_v7 }
 0x9a1   :  { %2876 = vmatpush3.bf16.msra.mxu0 %v2875_v52 }
 0x9a2   :  { %866 = vadd.xlane.f32.xlu0 %v865_v8  ;;  %2878 = vmatprep.subr.bf16.mxu0 %v2877_v53 }
 0x9a5   :  { %2880 = vmatpush3.bf16.msra.mxu0 %v2879_v58 }
 0x9a6   :  { %2882 = vmatprep.subr.bf16.mxu0 %v2881_v60 }
 0x9a9   :  { %2884 = vmatpush3.bf16.msra.mxu0 %v2883_v63 }
 0x9aa   :  { %2886 = vmatprep.subr.bf16.mxu0 %v2885_v12  ;;  %v1151_v12 = vld [vmem:[#allocation2 + $0x190] sm:$0xff] }
 0x9ad   :  { %2888 = vmatpush3.bf16.msra.mxu0 %v2887_v15  ;;  %v2938_v15 = vpack.c.bf16 %v1154_v13, %v1151_v12  ;;  %v1188_v12 = vld [vmem:[#allocation2 + $0x2b8] sm:$0xff]  ;;  %v1187_v13 = vld [vmem:[#allocation2 + $0x2b0] sm:$0xff] }
 0xa2f   :  { %v867_v0 = vpop.xlane.xlu0 %866 }
 0xa30   :  { %v868_v1 = vmul.f32 0.0078125, %v867_v0  ;;  %v2303_v0 = vld [vmem:[%s3964_s13] ss:$0 sm:$0xff] }
 0xa32   :  { %v869_v24 = vadd.f32 1e-12, %v868_v1 }
 0xa34   :  { %3128 = vrsqrt.f32 %v869_v24 }
 0xa3e   :  { %v3129_v2 = vpop.eup %3128 }
 0xa3f   :  { %v871_v4 = vmul.f32 %v3129_v2, %v3754_v7  ;;  %v1035_v7 = vld [vmem:[#allocation10 + $0xc0] sm:$0xff] }
 0xa40   :  { %v2889_v17 = vpack.c.bf16 %v1036_v16, %v1035_v7  ;;  %v1156_v7 = vld [vmem:[#allocation2 + $0x1b8] sm:$0xff]  ;;  %v1159_v16 = vld [vmem:[#allocation2 + $0x1d0] sm:$0xff] }
 0xa41   :  { %v878_v8 = vmul.f32 %v2301_v3, %v871_v4  ;;  %v1150_v4 = vld [vmem:[#allocation2 + $0x188] sm:$0xff]  ;;  %v2909_v18 = vpack.c.bf16 %v1159_v16, %v1156_v7  ;;  %v1195_v7 = vld [vmem:[#allocation2 + $0x2f0] sm:$0xff] }
 0xa42   :  { %2890 = vmatprep.subr.bf16.mxu0 %v2889_v17  ;;  %v1155_v17 = vld [vmem:[#allocation2 + $0x1b0] sm:$0xff] }
 0xa43   :  { %v3762_v9 = vadd.f32 %v2302_v6, %v878_v8  ;;  %2892 = vmatpush3.bf16.msra.mxu0 %v2891_v20  ;;  %v1153_v6 = vld [vmem:[#allocation2 + $0x1a0] sm:$0xff] }
 0xa44   :  { %2894 = vmatprep.subr.bf16.mxu0 %v2893_v23  ;;  %v1149_v8 = vld [vmem:[#allocation2 + $0x180] sm:$0xff]  ;;  %v2905_v10 = vpack.c.bf16 %v1153_v6, %v1150_v4  ;;  %v1162_v23 = vld [vmem:[#allocation2 + $0x1e8] sm:$0xff] }
 0xa45   :  { %995 = vmatmul.mubr.f32.vlgmr.msra.gmra.mrb[2].mxu1 %v3762_v9  ;;  %v2907_v14 = vpack.c.bf16 %v1152_v11, %v1149_v8  ;;  %v1157_v20 = vld [vmem:[#allocation2 + $0x1c0] sm:$0xff]  ;;  %v1186_v4 = vld [vmem:[#allocation2 + $0x2a8] sm:$0xff] }
 0xa46   :  { %1279 = vmatprep.mubr.f32.mxu1 %v3407_v57  ;;  %2906 = vmatprep.subr.bf16.mxu1 %v2905_v10  ;;  %v2941_v22 = vpack.c.bf16 %v1160_v21, %v1157_v20  ;;  %v1189_v6 = vld [vmem:[#allocation2 + $0x2c0] sm:$0xff]  ;;  %v1194_v20 = vld [vmem:[#allocation2 + $0x2e8] sm:$0xff] }
 0xa47   :  { %2896 = vmatpush3.bf16.msra.mxu0 %v2895_v31  ;;  %2908 = vmatpush1.bf16.msra.mxu1 %v2907_v14  ;;  %v2913_v31 = vpack.c.bf16 %v1165_v25, %v1162_v23  ;;  %v2929_v10 = vpack.c.bf16 %v1189_v6, %v1186_v4  ;;  %v1185_v11 = vld [vmem:[#allocation2 + $0x2a0] sm:$0xff]  ;;  %v1190_v14 = vld [vmem:[#allocation2 + $0x2c8] sm:$0xff] }
 0xa48   :  { %2898 = vmatprep.subr.bf16.mxu0 %v2897_v34  ;;  %2910 = vmatprep.subr.bf16.mxu1 %v2909_v18  ;;  %v1166_v34 = vld [vmem:[#allocation2 + $0x208] sm:$0xff]  ;;  %v2931_v16 = vpack.c.bf16 %v1188_v12, %v1185_v11  ;;  %v1193_v21 = vld [vmem:[#allocation2 + $0x2e0] sm:$0xff] }
 0xa49   :  { %v2944_v36 = vpack.c.bf16 %v1166_v34, %v1163_v33  ;;  %v2304_v33 = vld [vmem:[#allocation11] ss:$0 sm:$0xff] }
 0xa4b   :  { %2900 = vmatpush3.bf16.msra.mxu0 %v2899_v37 }
 0xa4c   :  { %2902 = vmatprep.subr.bf16.mxu0 %v2901_v40 }
 0xa4f   :  { %2904 = vmatpush3.bf16.msra.mxu0 %v2903_v44  ;;  %v2917_v44 = vpack.c.bf16 %v1171_v43, %v1168_v41 }
 0xa50   :  { %2937 = vmatprep.subr.bf16.mxu0 %v3406_v5 }
 0xb18   :  { %v996_v48 = vpop.f32.mrb[2].mxu1 }
 0xb19   :  { %v997_v49 = vadd.f32 %v996_v48, %v923_v46  ;;  %v998_v50 = vpop.f32.mrb[3].mxu1  ;;  %v1170_v46 = vld [vmem:[#allocation2 + $0x228] sm:$0xff] }
 0xb1a   :  { %v999_v51 = vadd.f32 %v998_v50, %v927_v47  ;;  %v1169_v47 = vld [vmem:[#allocation2 + $0x220] sm:$0xff]  ;;  %v2919_v48 = vpack.c.bf16 %v1170_v46, %v1167_v45 }
 0xb1b   :  { %v1003_v52 = vmul.f32 0.70710677, %v997_v49  ;;  %v1001_v60 = vmul.f32 0.5, %v997_v49  ;;  %v1172_v49 = vld [vmem:[#allocation2 + $0x238] sm:$0xff] }
 0xb1c   :  { %v1004_v53 = vmul.f32 0.70710677, %v999_v51  ;;  %v1002_v59 = vmul.f32 0.5, %v999_v51  ;;  %v2947_v50 = vpack.c.bf16 %v1172_v49, %v1169_v47  ;;  %v1174_v51 = vld [vmem:[#allocation2 + $0x248] sm:$0xff] }
 0xb1d   :  { %3130 = verf.f32 %v1003_v52  ;;  %v1177_v52 = vld [vmem:[#allocation2 + $0x260] sm:$0xff] }
 0xb1e   :  { %3132 = verf.f32 %v1004_v53  ;;  %v2921_v53 = vpack.c.bf16 %v1177_v52, %v1174_v51 }
 0xb27   :  { %v3131_v54 = vpop.eup %3130 }
 0xb28   :  { %v3133_v55 = vpop.eup %3132  ;;  %v1007_v56 = vadd.f32 1.0, %v3131_v54  ;;  %v1173_v54 = vld [vmem:[#allocation2 + $0x240] sm:$0xff] }
 0xb29   :  { %v1008_v58 = vadd.f32 1.0, %v3133_v55  ;;  %v1176_v55 = vld [vmem:[#allocation2 + $0x258] sm:$0xff] }
 0xb2a   :  { %v1009_v62 = vmul.f32 %v1007_v56, %v1001_v60  ;;  %v1175_v56 = vld [vmem:[#allocation2 + $0x250] sm:$0xff]  ;;  %v1180_v60 = vld [vmem:[#allocation2 + $0x278] sm:$0xff] }
 0xb2b   :  { %v1010_v61 = vmul.f32 %v1008_v58, %v1002_v59  ;;  %v2923_v59 = vpack.c.bf16 %v1176_v55, %v1173_v54  ;;  %v1178_v58 = vld [vmem:[#allocation2 + $0x268] sm:$0xff] }
 0xb2d   :  { %1114 = vmatprep.mubr.f32.mxu0 %v1010_v61  ;;  %v1183_v61 = vld [vmem:[#allocation2 + $0x290] sm:$0xff] }
 0xb2e   :  { %1115 = vmatmul.mubr.f32.vlgmr.msra.gmra.mrb[12].mxu0 %v1009_v62  ;;  %v2950_v62 = vpack.c.bf16 %v1178_v58, %v1175_v56 }
 0xb2f   :  { %2633 = vmatprep.mubr.msk.f32.mxu0 %vm3408_vm0, %v3407_v57  ;;  %2939 = vmatpush3.bf16.msra.mxu0 %v2938_v15  ;;  %v1192_v15 = vld [vmem:[#allocation2 + $0x2d8] sm:$0xff] }
 0xb30   :  { %2940 = vmatprep.subr.bf16.mxu0 %v3406_v5  ;;  %v2933_v18 = vpack.c.bf16 %v1195_v7, %v1192_v15 }
 0xb33   :  { %2942 = vmatpush3.bf16.msra.mxu0 %v2941_v22 }
 0xb34   :  { %2943 = vmatprep.subr.bf16.mxu0 %v3406_v5 }
 0xb37   :  { %2945 = vmatpush3.bf16.msra.mxu0 %v2944_v36 }
 0xb38   :  { %2946 = vmatprep.subr.bf16.mxu0 %v3406_v5 }
 0xb3b   :  { %2948 = vmatpush3.bf16.msra.mxu0 %v2947_v50 }
 0xb3c   :  { %2949 = vmatprep.subr.bf16.mxu0 %v3406_v5 }
 0xb3f   :  { %2951 = vmatpush3.bf16.msra.mxu0 %v2950_v62 }
 0xb40   :  { %2952 = vmatprep.subr.bf16.mxu0 %v3406_v5 }
 0xc01   :  { %v2397_v63 = vpop.f32.mrb[12].mxu0 }
 0xc02   :  { %v2398_v1 = vpop.f32.mrb[13].mxu0 }
 0xc03   :  { %v2399_v24 = vadd.f32 %v2398_v1, %v2397_v63  ;;  %v2925_v63 = vpack.c.bf16 %v1183_v61, %v1180_v60  ;;  %v1182_v1 = vld [vmem:[#allocation2 + $0x288] sm:$0xff] }
 0xc05   :  { %v1117_v2 = vadd.f32 %v2399_v24, %v2303_v0  ;;  %v1179_v0 = vld [vmem:[#allocation2 + $0x270] sm:$0xff]  ;;  %v1181_v24 = vld [vmem:[#allocation2 + $0x280] sm:$0xff] }
 0xc07   :  { %v1120_v3 = vadd.f32 %v1117_v2, %v3762_v9  ;;  %v2911_v9 = vpack.c.bf16 %v1158_v19, %v1155_v17  ;;  %v2927_v2 = vpack.c.bf16 %v1182_v1, %v1179_v0  ;;  %v2956_v17 = vpack.c.bf16 %v1190_v14, %v1187_v13  ;;  %v1191_v19 = vld [vmem:[#allocation2 + $0x2d0] sm:$0xff] }
 0xc08   :  { %v2935_v22 = vpack.c.bf16 %v1194_v20, %v1191_v19  ;;  %v1695_v20 = vld [vmem:[#allocation5 + $0x98] sm:$0xff] }
 0xc09   :  { %1123 = vadd.xlane.f32.xlu0 %v1120_v3  ;;  %2912 = vmatpush1.bf16.msra.mxu1 %v2911_v9  ;;  %v1196_v9 = vld [vmem:[#allocation2 + $0x2f8] sm:$0xff] }
 0xc0a   :  { %2914 = vmatprep.subr.bf16.mxu1 %v2913_v31  ;;  %v2959_v23 = vpack.c.bf16 %v1196_v9, %v1193_v21  ;;  %v1696_v9 = vld [vmem:[#allocation5 + $0xa0] sm:$0xff] }
 0xc0d   :  { %2916 = vmatpush1.bf16.msra.mxu1 %v2915_v35  ;;  %v2305_v35 = vld [vmem:[#allocation13] ss:$0 sm:$0xff] }
 0xc0e   :  { %2918 = vmatprep.subr.bf16.mxu1 %v2917_v44 }
 0xc11   :  { %2920 = vmatpush1.bf16.msra.mxu1 %v2919_v48 }
 0xc12   :  { %2922 = vmatprep.subr.bf16.mxu1 %v2921_v53 }
 0xc15   :  { %2924 = vmatpush1.bf16.msra.mxu1 %v2923_v59 }
 0xc16   :  { %2926 = vmatprep.subr.bf16.mxu1 %v2925_v63 }
 0xc19   :  { %2928 = vmatpush1.bf16.msra.mxu1 %v2927_v2 }
 0xc1a   :  { %2930 = vmatprep.subr.bf16.mxu1 %v2929_v10 }
 0xc1d   :  { %2932 = vmatpush1.bf16.msra.mxu1 %v2931_v16  ;;  %v1692_v16 = vld [vmem:[#allocation5 + $0x80] sm:$0xff] }
 0xc1e   :  { %2934 = vmatprep.subr.bf16.mxu1 %v2933_v18  ;;  %v1694_v18 = vld [vmem:[#allocation5 + $0x90] sm:$0xff] }
 0xc1f   :  { %v2965_v21 = vpack.c.bf16 %v1695_v20, %v1694_v18  ;;  %v1836_v18 = vld [vmem:[#allocation8 + $0x198] sm:$0xff]  ;;  %v1833_v20 = vld [vmem:[#allocation8 + $0x180] sm:$0xff] }
 0xc21   :  { %2936 = vmatpush1.bf16.msra.mxu1 %v2935_v22  ;;  %v1697_v22 = vld [vmem:[#allocation5 + $0xa8] sm:$0xff] }
 0xc22   :  { %2636 = vmatprep.subr.mxu1 %v3407_v57 }
 0xc96   :  { %v1124_v37 = vpop.xlane.xlu0 %1123 }
 0xc97   :  { %v1125_v38 = vmul.f32 0.0078125, %v1124_v37 }
 0xc99   :  { %v3781_v39 = vsub.f32 %v1120_v3, %v1125_v38  ;;  %v1184_v3 = vld [vmem:[#allocation2 + $0x298] sm:$0xff]  ;;  %v2306_v38 = vld [vmem:[%s3956_s5 + $0x3] sm:$0x7] }
 0xc9a   :  { %v2953_v8 = vpack.c.bf16 %v1184_v3, %v1181_v24  ;;  %v1203_v43 = vrot.slane %v2306_v38, %v3699_v29  ;;  %v1211_v46 = vrot.slane %v2306_v38, %v276_v30 }
 0xc9b   :  { %v1127_v40 = vmul.f32 %v3781_v39, %v3781_v39 }
 0xc9c   :  { %2954 = vmatpush3.bf16.msra.mxu0 %v2953_v8 }
 0xc9d   :  { %1128 = vadd.xlane.f32.xlu1 %v1127_v40  ;;  %2955 = vmatprep.subr.bf16.mxu0 %v3406_v5  ;;  %v1207_v40 = vrot.slane %v2306_v38, %v3693_v27 }
 0xca0   :  { %2957 = vmatpush3.bf16.msra.mxu0 %v2956_v17  ;;  %v1693_v17 = vld [vmem:[#allocation5 + $0x88] sm:$0xff] }
 0xca1   :  { %2958 = vmatprep.subr.bf16.mxu0 %v3406_v5  ;;  %v2962_v19 = vpack.c.bf16 %v1693_v17, %v1692_v16  ;;  %v1834_v17 = vld [vmem:[#allocation8 + $0x188] sm:$0xff] }
 0xca4   :  { %2960 = vmatpush3.bf16.msra.mxu0 %v2959_v23  ;;  %v2968_v23 = vpack.c.bf16 %v1697_v22, %v1696_v9  ;;  %v1838_v9 = vld [vmem:[#allocation8 + $0x1a8] sm:$0xff] }
 0xd2a   :  { %v1129_v25 = vpop.xlane.xlu1 %1128 }
 0xd2b   :  { %v1130_v28 = vmul.f32 0.0078125, %v1129_v25  ;;  %v1698_v25 = vld [vmem:[#allocation5 + $0xb0] sm:$0xff] }
 0xd2d   :  { %v1131_v31 = vadd.f32 1e-12, %v1130_v28  ;;  %v1699_v28 = vld [vmem:[#allocation5 + $0xb8] sm:$0xff] }
 0xd2f   :  { %3134 = vrsqrt.f32 %v1131_v31  ;;  %v2971_v31 = vpack.c.bf16 %v1699_v28, %v1698_v25  ;;  %v1837_v25 = vld [vmem:[#allocation8 + $0x1a0] sm:$0xff]  ;;  %v1839_v28 = vld [vmem:[#allocation8 + $0x1b0] sm:$0xff] }
 0xd39   :  { %v3135_v32 = vpop.eup %3134 }
 0xd3a   :  { %v1133_v34 = vmul.f32 %v3135_v32, %v3781_v39  ;;  %v1700_v32 = vld [vmem:[#allocation5 + $0xc0] sm:$0xff] }
 0xd3c   :  { %v1140_v36 = vmul.f32 %v2304_v33, %v1133_v34  ;;  %v1701_v33 = vld [vmem:[#allocation5 + $0xc8] sm:$0xff] }
 0xd3d   :  { %v2974_v34 = vpack.c.bf16 %v1701_v33, %v1700_v32  ;;  %v1842_v32 = vld [vmem:[#allocation8 + $0x1c8] sm:$0xff]  ;;  %v1844_v33 = vld [vmem:[#allocation8 + $0x1d8] sm:$0xff] }
 0xd3e   :  { %v3791_v37 = vadd.f32 %v2305_v35, %v1140_v36  ;;  %v1702_v35 = vld [vmem:[#allocation5 + $0xd0] sm:$0xff]  ;;  %v1703_v36 = vld [vmem:[#allocation5 + $0xd8] sm:$0xff] }
 0xd3f   :  { %v2977_v38 = vpack.c.bf16 %v1703_v36, %v1702_v35  ;;  %v3009_v35 = vpack.c.bf16 %v1844_v33, %v1842_v32  ;;  %v1841_v36 = vld [vmem:[#allocation8 + $0x1c0] sm:$0xff] }
 0xd40   :  { %1280 = vmatmul.mubr.f32.vlgmr.msra.gmra.mrb[4].mxu1 %v3791_v37  ;;  %2634 = vmatmul.mubr.f32.vlgmr.msra.gmra.mrb[14].mxu0 %v3791_v37  ;;  %v1956_v33 = vld [vmem:[#allocation10 + $0x160] sm:$0xff] }
 0xd41   :  { %2638 = vmatprep.mubr.msk.f32.mxu1 %vm3408_vm0, %v3407_v57  ;;  %1926 = vmatprep.mubr.f32.mxu0 %v3407_v57 }
 0xe13   :  { %v1281_v39 = vpop.f32.mrb[4].mxu1  ;;  %v1352_v41 = vpop.f32.mrb[14].mxu0 }
 0xe14   :  { %v1283_v44 = vpop.f32.mrb[5].mxu1  ;;  %v2635_v45 = vpop.f32.mrb[15].mxu0  ;;  %v1282_v48 = vadd.f32 %v1281_v39, %v1203_v43  ;;  %v1353_v49 = vadd.f32 %v1352_v41, %v1211_v46  ;;  %v1705_v39 = vld [vmem:[#allocation5 + $0xe8] sm:$0xff]  ;;  %v1706_v43 = vld [vmem:[#allocation5 + $0xf0] sm:$0xff] }
 0xe15   :  { %v1284_v47 = vadd.f32 %v1283_v44, %v1207_v40  ;;  %v1704_v40 = vld [vmem:[#allocation5 + $0xe0] sm:$0xff]  ;;  %v1707_v44 = vld [vmem:[#allocation5 + $0xf8] sm:$0xff] }
 0xe16   :  { %v2980_v41 = vpack.c.bf16 %v1705_v39, %v1704_v40  ;;  %v2983_v45 = vpack.c.bf16 %v1707_v44, %v1706_v43  ;;  %v1846_v40 = vld [vmem:[#allocation8 + $0x1e8] sm:$0xff]  ;;  %v1848_v39 = vld [vmem:[#allocation8 + $0x1f8] sm:$0xff]  ;;  %v1845_v44 = vld [vmem:[#allocation8 + $0x1e0] sm:$0xff] }
 0xe17   :  { %2637 = vmatpush3.xpose.msk.msra.mxu1 %vm422_vm1, %v1284_v47  ;;  %v3013_v43 = vpack.c.bf16 %v1848_v39, %v1846_v40  ;;  %v1958_v39 = vld [vmem:[#allocation10 + $0x170] sm:$0xff] }
 0xe18   :  { %2641 = vmatprep.subr.mxu1 %v3407_v57 }
 0xe1a   :  { %2639 = vmatmul.mubr.msk.f32.vlgmr.msra.gmra.mrb[6].mxu1 %vm422_vm1, %v1282_v48 }
 0xe1b   :  { %2642 = vmatpush3.msra.mxu1 %v1353_v49  ;;  %2643 = vmatprep.mubr.msk.f32.mxu1 %vm3408_vm0, %v3407_v57 }
 0xe1c   :  { %2646 = vmatprep.subr.mxu1 %v3407_v57 }
 0xeed   :  { %v1428_v50 = vpop.f32.mrb[6].mxu1 }
 0xeee   :  { %v1432_v51 = vmul.f32 0.125, %v1428_v50  ;;  %v2640_v52 = vpop.f32.mrb[7].mxu1  ;;  %v2314_v50 = vld [vmem:[%s3958_s7 + $0x1] ss:$0 sm:$0xff] }
 0xef0   :  { %v1433_v26 = vadd.f32 %v3716_v42, %v1432_v51 }
 0xef2   :  { %v1434_v30 = vsel %vm507_vm2, %v1433_v26, -inf }
 0xef3   :  { %1435 = vmax.xlane.f32.xlu0 %v1434_v30 }
 0xf09   :  { %1520 = vrot.lane.b32.xlu0 %v1284_v47, %s3409_s6 }
 0xf80   :  { %v1436_v53 = vpop.xlane.xlu0 %1435 }
 0xf81   :  { %v1437_v54 = vsub.f32 %v1433_v26, %v1436_v53  ;;  %v1818_v53 = vld [vmem:[#allocation8 + $0x108] sm:$0xff] }
 0xf83   :  { %v1438_v55 = vmul.f32 1.442695, %v1437_v54  ;;  %v1820_v54 = vld [vmem:[#allocation8 + $0x118] sm:$0xff] }
 0xf84   :  { %v1521_v62 = vpop.permute.xlu0 %1520 }
 0xf85   :  { %3136 = vpow2.f32 %v1438_v55  ;;  %v1817_v55 = vld [vmem:[#allocation8 + $0x100] sm:$0xff] }
 0xf8f   :  { %v3137_v56 = vpop.eup %3136 }
 0xf90   :  { %v1440_v59 = vsel %vm507_vm2, %v3137_v56, 0.0 }
 0xf91   :  { %1441 = vadd.xlane.f32.xlu1 %v1440_v59  ;;  %v1819_v59 = vld [vmem:[#allocation8 + $0x110] sm:$0xff] }
 0xfa2   :  { %1518 = vrot.lane.b32.xlu1 %v1282_v48, %s3409_s6 }
0x101e   :  { %v1442_v58 = vpop.xlane.xlu1 %1441 }
0x101f   :  { %3138 = vrcp.f32 %v1442_v58  ;;  %v1822_v58 = vld [vmem:[#allocation8 + $0x128] sm:$0xff] }
0x1022   :  { %v1519_v63 = vpop.permute.xlu1 %1518 }
0x1029   :  { %v3139_v60 = vpop.eup %3138 }
0x102a   :  { %v1444_v61 = vmul.f32 %v3139_v60, %v3137_v56  ;;  %v2985_v56 = vpack.c.bf16 %v1820_v54, %v1818_v53  ;;  %v1824_v60 = vld [vmem:[#allocation8 + $0x138] sm:$0xff]  ;;  %v1946_v54 = vld [vmem:[#allocation10 + $0x110] sm:$0xff] }
0x102c   :  { %2644 = vmatmul.mubr.msk.f32.vlgmr.msra.gmra.mrb[8].mxu1 %vm507_vm2, %v1444_v61  ;;  %v2987_v61 = vpack.c.bf16 %v1819_v59, %v1817_v55  ;;  %2986 = vmatprep.subr.bf16.mxu0 %v2985_v56  ;;  %v1947_v55 = vld [vmem:[#allocation10 + $0x118] sm:$0xff]  ;;  %v1964_v56 = vld [vmem:[#allocation10 + $0x1a0] sm:$0xff]  ;;  %v1965_v59 = vld [vmem:[#allocation10 + $0x1a8] sm:$0xff] }
0x102d   :  { %2647 = vmatpush3.xpose.msk.msra.mxu1 %vm422_vm1, %v1521_v62  ;;  %2648 = vmatprep.mubr.msk.f32.mxu1 %vm3408_vm0, %v3407_v57  ;;  %v2989_v62 = vpack.c.bf16 %v1824_v60, %v1822_v58  ;;  %v3023_v58 = vpack.c.bf16 %v1947_v55, %v1946_v54  ;;  %v3025_v60 = vpack.c.bf16 %v1965_v59, %v1964_v56 }
0x102e   :  { %2651 = vmatprep.subr.mxu1 %v3407_v57  ;;  %2988 = vmatpush1.bf16.msra.mxu0 %v2987_v61  ;;  %v1948_v61 = vld [vmem:[#allocation10 + $0x120] sm:$0xff] }
0x102f   :  { %2990 = vmatprep.subr.bf16.mxu0 %v2989_v62  ;;  %v1949_v62 = vld [vmem:[#allocation10 + $0x128] sm:$0xff] }
0x1030   :  { %2649 = vmatmul.mubr.msk.f32.vlgmr.msra.gmra.mrb[10].mxu1 %vm422_vm1, %v1519_v63  ;;  %v1821_v63 = vld [vmem:[#allocation8 + $0x120] sm:$0xff] }
0x1031   :  { %2653 = vmatprep.mubr.msk.f32.mxu1 %vm3408_vm0, %v3407_v57 }
0x10ff   :  { %v3824_v0 = vpop.f32.mrb[8].mxu1 }
0x1100   :  { %v2645_v1 = vpop.f32.mrb[9].mxu1 }
0x1101   :  { %v1826_v1 = vld [vmem:[#allocation8 + $0x148] sm:$0xff] }
0x1103   :  { %v1592_v24 = vpop.f32.mrb[10].mxu1 }
0x1104   :  { %v1596_v2 = vmul.f32 0.125, %v1592_v24  ;;  %v2650_v3 = vpop.f32.mrb[11].mxu1  ;;  %v1828_v24 = vld [vmem:[#allocation8 + $0x158] sm:$0xff] }
0x1105   :  { %v2993_v3 = vpack.c.bf16 %v1828_v24, %v1826_v1 }
0x1106   :  { %v1597_v4 = vadd.f32 %v3716_v42, %v1596_v2 }
0x1108   :  { %v1598_v6 = vsel %vm507_vm2, %v1597_v4, -inf }
0x1109   :  { %1599 = vmax.xlane.f32.xlu1 %v1598_v6 }
0x1196   :  { %v1600_v8 = vpop.xlane.xlu1 %1599 }
0x1197   :  { %v1601_v10 = vsub.f32 %v1597_v4, %v1600_v8  ;;  %v1827_v4 = vld [vmem:[#allocation8 + $0x150] sm:$0xff] }
0x1199   :  { %v1602_v11 = vmul.f32 1.442695, %v1601_v10 }
0x119b   :  { %3140 = vpow2.f32 %v1602_v11 }
0x11a5   :  { %v3141_v12 = vpop.eup %3140 }
0x11a6   :  { %v1604_v13 = vsel %vm507_vm2, %v3141_v12, 0.0 }
0x11a7   :  { %1605 = vadd.xlane.f32.xlu0 %v1604_v13  ;;  %v1830_v13 = vld [vmem:[#allocation8 + $0x168] sm:$0xff] }
0x11bd   :  { %1610 = vrot.lane.b32.xlu0 %v1353_v49, %s3409_s6 }
0x1234   :  { %v1606_v14 = vpop.xlane.xlu0 %1605 }
0x1235   :  { %3142 = vrcp.f32 %v1606_v14  ;;  %v1832_v14 = vld [vmem:[#allocation8 + $0x178] sm:$0xff] }
0x1238   :  { %v1611_v15 = vpop.permute.xlu0 %1610 }
0x1239   :  { %2652 = vmatpush3.msra.mxu1 %v1611_v15  ;;  %v2997_v15 = vpack.c.bf16 %v1832_v14, %v1830_v13  ;;  %v1950_v14 = vld [vmem:[#allocation10 + $0x130] sm:$0xff] }
0x123a   :  { %2961 = vmatprep.subr.bf16.mxu1 %v3406_v5 }
0x123f   :  { %v3143_v42 = vpop.eup %3142 }
0x1240   :  { %v1608_v7 = vmul.f32 %v3143_v42, %v3141_v12  ;;  %v1829_v42 = vld [vmem:[#allocation8 + $0x160] sm:$0xff] }
0x1242   :  { %2654 = vmatmul.mubr.msk.f32.vlgmr.msra.gmra.mrb[12].mxu1 %vm507_vm2, %v1608_v7  ;;  %v1831_v7 = vld [vmem:[#allocation8 + $0x170] sm:$0xff] }
0x1243   :  { %2688 = vmatprep.mubr.msk.f32.mxu1 %vm3408_vm0, %v3407_v57  ;;  %2963 = vmatpush3.bf16.msra.mxu1 %v2962_v19  ;;  %v2999_v16 = vpack.c.bf16 %v1831_v7, %v1829_v42  ;;  %v3001_v19 = vpack.c.bf16 %v1836_v18, %v1834_v17  ;;  %v1969_v7 = vld [vmem:[#allocation10 + $0x1c8] sm:$0xff]  ;;  %v1952_v17 = vld [vmem:[#allocation10 + $0x140] sm:$0xff] }
0x1244   :  { %2964 = vmatprep.subr.bf16.mxu1 %v3406_v5  ;;  %v1953_v18 = vld [vmem:[#allocation10 + $0x148] sm:$0xff] }
0x1247   :  { %2966 = vmatpush3.bf16.msra.mxu1 %v2965_v21  ;;  %v1835_v21 = vld [vmem:[#allocation8 + $0x190] sm:$0xff] }
0x1248   :  { %2967 = vmatprep.subr.bf16.mxu1 %v3406_v5  ;;  %v3003_v22 = vpack.c.bf16 %v1835_v21, %v1833_v20  ;;  %v1970_v20 = vld [vmem:[#allocation10 + $0x1d0] sm:$0xff]  ;;  %v1971_v21 = vld [vmem:[#allocation10 + $0x1d8] sm:$0xff] }
0x124b   :  { %2969 = vmatpush3.bf16.msra.mxu1 %v2968_v23  ;;  %v1840_v23 = vld [vmem:[#allocation8 + $0x1b8] sm:$0xff] }
0x124c   :  { %2970 = vmatprep.subr.bf16.mxu1 %v3406_v5 }
0x124f   :  { %2972 = vmatpush3.bf16.msra.mxu1 %v2971_v31  ;;  %v3005_v31 = vpack.c.bf16 %v1840_v23, %v1838_v9  ;;  %v3037_v9 = vpack.c.bf16 %v1971_v21, %v1970_v20  ;;  %v1955_v23 = vld [vmem:[#allocation10 + $0x158] sm:$0xff]  ;;  %v2097_v21 = vld [vmem:[%s3967_s16 + $0x68] sm:$0xff] }
0x1250   :  { %2973 = vmatprep.subr.bf16.mxu1 %v3406_v5  ;;  %v2096_v20 = vld [vmem:[%s3967_s16 + $0x60] sm:$0xff] }
0x1253   :  { %2975 = vmatpush3.bf16.msra.mxu1 %v2974_v34  ;;  %v3007_v34 = vpack.c.bf16 %v1839_v28, %v1837_v25  ;;  %v1972_v28 = vld [vmem:[#allocation10 + $0x1e0] sm:$0xff] }
0x1254   :  { %2976 = vmatprep.subr.bf16.mxu1 %v3406_v5 }
0x1257   :  { %2978 = vmatpush3.bf16.msra.mxu1 %v2977_v38  ;;  %v1843_v38 = vld [vmem:[#allocation8 + $0x1d0] sm:$0xff] }
0x1258   :  { %2979 = vmatprep.subr.bf16.mxu1 %v3406_v5 }
0x125b   :  { %2981 = vmatpush3.bf16.msra.mxu1 %v2980_v41  ;;  %v3011_v41 = vpack.c.bf16 %v1843_v38, %v1841_v36  ;;  %v1974_v36 = vld [vmem:[#allocation10 + $0x1f0] sm:$0xff]  ;;  %v1975_v38 = vld [vmem:[#allocation10 + $0x1f8] sm:$0xff] }
0x125c   :  { %2982 = vmatprep.subr.bf16.mxu1 %v3406_v5  ;;  %v3045_v40 = vpack.c.bf16 %v1975_v38, %v1974_v36  ;;  %v2176_v36 = vld [vmem:[#allocation16 + $0x20] sm:$0xff]  ;;  %v2177_v38 = vld [vmem:[#allocation16 + $0x28] sm:$0xff] }
0x125f   :  { %2984 = vmatpush3.bf16.msra.mxu1 %v2983_v45  ;;  %v1847_v45 = vld [vmem:[#allocation8 + $0x1f0] sm:$0xff] }
0x1315   :  { %v1682_v46 = vpop.f32.mrb[12].mxu1 }
0x1316   :  { %1687 = vrot.lane.b32.xlu1 %v1682_v46, %s3409_s6  ;;  %v2655_v47 = vpop.f32.mrb[13].mxu1  ;;  %v3015_v46 = vpack.c.bf16 %v1847_v45, %v1845_v44  ;;  %v2318_v44 = vld [vmem:[%s3962_s11 + $0x2] sm:$0x3]  ;;  %s3410_s6 = smov [#allocation17]  }
0x1317   :  { %v1960_v47 = vld [vmem:[#allocation10 + $0x180] sm:$0xff]  ;;  %v1855_v45 = vrot.slane %v2318_v44, %v3699_v29  ;;  %v2320_v29 = vld [vmem:[%s3964_s13 + $0x1] ss:$0 sm:$0xff]  ;;  %s2278_s13 = sshll.u32 %s3410_s6, 4  ;;  %s2279_s13 = int_to_ptr.vmem [resolvable:$true] %s2278_s13 }
0x1318   :  { %s3360_s29 = scalar_lea.vmem %s2279_s13, 32  ;;  %p3361_p3 = scmp.lt.s32.totalorder %s2279_s13, %s2279_s13 }
0x1388   :  { %v1688_v48 = vpop.permute.xlu1 %1687 }
0x1389   :  { %v1690_v49 = vsel %vm422_vm1, %v3824_v0, %v1688_v48  ;;  %v1823_v0 = vld [vmem:[#allocation8 + $0x130] sm:$0xff]  ;;  %v1961_v48 = vld [vmem:[#allocation10 + $0x188] sm:$0xff] }
0x138a   :  { %2689 = vmatmul.mubr.f32.vlgmr.msra.gmra.mrb[14].mxu1 %v1690_v49  ;;  %v2991_v2 = vpack.c.bf16 %v1823_v0, %v1821_v63  ;;  %v1944_v49 = vld [vmem:[#allocation10 + $0x100] sm:$0xff]  ;;  %v3027_v63 = vpack.c.bf16 %v1949_v62, %v1948_v61 }
0x138c   :  { %2992 = vmatpush1.bf16.msra.mxu0 %v2991_v2 }
0x138d   :  { %2994 = vmatprep.subr.bf16.mxu0 %v2993_v3  ;;  %v2316_v3 = vld [vmem:[#allocation7 + $0x1] ss:$0 sm:$0xff] }
0x145d   :  { %v1782_v51 = vpop.f32.mrb[14].mxu1 }
0x145e   :  { %v1783_v52 = vadd.f32 %v2314_v50, %v1782_v51  ;;  %v2690_v26 = vpop.f32.mrb[15].mxu1  ;;  %v3017_v50 = vpack.c.bf16 %v1961_v48, %v1960_v47  ;;  %v1945_v51 = vld [vmem:[#allocation10 + $0x108] sm:$0xff] }
0x145f   :  { %v1963_v26 = vld [vmem:[#allocation10 + $0x198] sm:$0xff] }
0x1460   :  { %v1786_v30 = vadd.f32 %v1783_v52, %v3791_v37  ;;  %v1825_v37 = vld [vmem:[#allocation8 + $0x140] sm:$0xff]  ;;  %v1962_v52 = vld [vmem:[#allocation10 + $0x190] sm:$0xff]  ;;  %3018 = vmatprep.subr.bf16.mxu1 %v3017_v50 }
0x1461   :  { %v2995_v6 = vpack.c.bf16 %v1827_v4, %v1825_v37  ;;  %v3021_v53 = vpack.c.bf16 %v1963_v26, %v1962_v52  ;;  %v2317_v4 = vld [vmem:[%s3960_s9 + $0x1] ss:$0 sm:$0xff] }
0x1462   :  { %1791 = vadd.xlane.f32.xlu1 %v1786_v30 }
0x1463   :  { %2996 = vmatpush1.bf16.msra.mxu0 %v2995_v6 }
0x1464   :  { %2998 = vmatprep.subr.bf16.mxu0 %v2997_v15  ;;  %v1951_v15 = vld [vmem:[#allocation10 + $0x138] sm:$0xff] }
0x1465   :  { %v3031_v42 = vpack.c.bf16 %v1951_v15, %v1950_v14  ;;  %v2090_v14 = vld [vmem:[%s3967_s16 + $0x30] sm:$0xff]  ;;  %v2091_v15 = vld [vmem:[%s3967_s16 + $0x38] sm:$0xff] }
0x1467   :  { %3000 = vmatpush1.bf16.msra.mxu0 %v2999_v16 }
0x1468   :  { %3002 = vmatprep.subr.bf16.mxu0 %v3001_v19  ;;  %v3035_v19 = vpack.c.bf16 %v1953_v18, %v1952_v17  ;;  %v2095_v18 = vld [vmem:[%s3967_s16 + $0x58] sm:$0xff] }
0x146b   :  { %3004 = vmatpush1.bf16.msra.mxu0 %v3003_v22  ;;  %v1954_v22 = vld [vmem:[#allocation10 + $0x150] sm:$0xff] }
0x146c   :  { %3006 = vmatprep.subr.bf16.mxu0 %v3005_v31  ;;  %v3039_v25 = vpack.c.bf16 %v1955_v23, %v1954_v22  ;;  %v1973_v31 = vld [vmem:[#allocation10 + $0x1e8] sm:$0xff]  ;;  %v2099_v23 = vld [vmem:[%s3967_s16 + $0x78] sm:$0xff] }
0x146d   :  { %v3041_v32 = vpack.c.bf16 %v1973_v31, %v1972_v28  ;;  %v2098_v22 = vld [vmem:[%s3967_s16 + $0x70] sm:$0xff]  ;;  %v2172_v28 = vld [vmem:[#allocation16] sm:$0xff] }
0x146e   :  { %v2173_v31 = vld [vmem:[#allocation16 + $0x8] sm:$0xff] }
0x146f   :  { %3008 = vmatpush1.bf16.msra.mxu0 %v3007_v34  ;;  %v1957_v34 = vld [vmem:[#allocation10 + $0x168] sm:$0xff] }
0x1470   :  { %3010 = vmatprep.subr.bf16.mxu0 %v3009_v35  ;;  %v3043_v35 = vpack.c.bf16 %v1957_v34, %v1956_v33  ;;  %v3074_v33 = vpack.c.bf16 %v2173_v31, %v2172_v28  ;;  %v2175_v34 = vld [vmem:[#allocation16 + $0x18] sm:$0xff] }
0x1473   :  { %3012 = vmatpush1.bf16.msra.mxu0 %v3011_v41  ;;  %v1959_v41 = vld [vmem:[#allocation10 + $0x178] sm:$0xff] }
0x1474   :  { %3014 = vmatprep.subr.bf16.mxu0 %v3013_v43  ;;  %v3047_v43 = vpack.c.bf16 %v1959_v41, %v1958_v39  ;;  %v2178_v39 = vld [vmem:[#allocation16 + $0x30] sm:$0xff]  ;;  %v2179_v41 = vld [vmem:[#allocation16 + $0x38] sm:$0xff] }
0x1477   :  { %3016 = vmatpush1.bf16.msra.mxu0 %v3015_v46  ;;  %v1859_v46 = vrot.slane %v2318_v44, %v3693_v27  ;;  %v2180_v44 = vld [vmem:[#allocation16 + $0x40] sm:$0xff] }
0x1478   :  { %3049 = vmatprep.subr.bf16.mxu0 %v3406_v5 }
0x14ef   :  { %v1792_v8 = vpop.xlane.xlu1 %1791 }
0x14f0   :  { %v1793_v10 = vmul.f32 0.0078125, %v1792_v8 }
0x14f2   :  { %v3848_v11 = vsub.f32 %v1786_v30, %v1793_v10  ;;  %v3019_v30 = vpack.c.bf16 %v1945_v51, %v1944_v49  ;;  %v1966_v10 = vld [vmem:[#allocation10 + $0x1b0] sm:$0xff] }
0x14f4   :  { %v1795_v12 = vmul.f32 %v3848_v11, %v3848_v11  ;;  %3020 = vmatpush3.bf16.msra.mxu1 %v3019_v30 }
0x14f5   :  { %3022 = vmatprep.subr.bf16.mxu1 %v3021_v53 }
0x14f6   :  { %1796 = vadd.xlane.f32.xlu0 %v1795_v12  ;;  %v1967_v12 = vld [vmem:[#allocation10 + $0x1b8] sm:$0xff] }
0x14f7   :  { %v3029_v13 = vpack.c.bf16 %v1967_v12, %v1966_v10 }
0x14f8   :  { %3024 = vmatpush3.bf16.msra.mxu1 %v3023_v58 }
0x14f9   :  { %3026 = vmatprep.subr.bf16.mxu1 %v3025_v60 }
0x14fc   :  { %3028 = vmatpush3.bf16.msra.mxu1 %v3027_v63 }
0x14fd   :  { %3030 = vmatprep.subr.bf16.mxu1 %v3029_v13 }
0x1500   :  { %3032 = vmatpush3.bf16.msra.mxu1 %v3031_v42  ;;  %v3059_v42 = vpack.c.bf16 %v2091_v15, %v2090_v14 }
0x1583   :  { %v1797_v0 = vpop.xlane.xlu0 %1796 }
0x1584   :  { %v1798_v1 = vmul.f32 0.0078125, %v1797_v0  ;;  %v2084_v0 = vld [vmem:[%s3967_s16] sm:$0xff] }
0x1586   :  { %v1799_v24 = vadd.f32 1e-12, %v1798_v1  ;;  %v2085_v1 = vld [vmem:[%s3967_s16 + $0x8] sm:$0xff] }
0x1588   :  { %3144 = vrsqrt.f32 %v1799_v24  ;;  %v3050_v24 = vpack.c.bf16 %v2085_v1, %v2084_v0 }
0x1592   :  { %v3145_v2 = vpop.eup %3144 }
0x1593   :  { %v1801_v37 = vmul.f32 %v3145_v2, %v3848_v11  ;;  %v1968_v11 = vld [vmem:[#allocation10 + $0x1c0] sm:$0xff]  ;;  %v2087_v2 = vld [vmem:[%s3967_s16 + $0x18] sm:$0xff] }
0x1594   :  { %v3033_v16 = vpack.c.bf16 %v1969_v7, %v1968_v11  ;;  %v2092_v11 = vld [vmem:[%s3967_s16 + $0x40] sm:$0xff]  ;;  %v2093_v7 = vld [vmem:[%s3967_s16 + $0x48] sm:$0xff] }
0x1595   :  { %v1808_v6 = vmul.f32 %v2316_v3, %v1801_v37  ;;  %v2088_v37 = vld [vmem:[%s3967_s16 + $0x20] sm:$0xff]  ;;  %v3062_v17 = vpack.c.bf16 %v2093_v7, %v2092_v11 }
0x1596   :  { %3034 = vmatprep.subr.bf16.mxu1 %v3033_v16  ;;  %v2094_v16 = vld [vmem:[%s3967_s16 + $0x50] sm:$0xff] }
0x1597   :  { %v3857_v8 = vadd.f32 %v2317_v4, %v1808_v6  ;;  %3036 = vmatpush3.bf16.msra.mxu1 %v3035_v19  ;;  %v2089_v4 = vld [vmem:[%s3967_s16 + $0x28] sm:$0xff]  ;;  %v3065_v19 = vpack.c.bf16 %v2095_v18, %v2094_v16 }
0x1598   :  { %3038 = vmatprep.subr.bf16.mxu1 %v3037_v9  ;;  %v3056_v6 = vpack.c.bf16 %v2089_v4, %v2088_v37  ;;  %v3068_v9 = vpack.c.bf16 %v2097_v21, %v2096_v20 }
0x1599   :  { %1927 = vmatmul.mubr.f32.vlgmr.msra.gmra.mrb[16].mxu0 %v3857_v8 }
0x159a   :  { %2723 = vmatprep.mubr.msk.f32.mxu0 %vm3408_vm0, %v3407_v57  ;;  %3051 = vmatpush3.bf16.msra.mxu0 %v3050_v24  ;;  %v2188_v24 = vld [vmem:[%s3970_s19] sm:$0x1]  ;;  %s3356_s19 = scalar_lea.vmem %s2279_s13, 16 }
0x159b   :  { %3040 = vmatpush3.bf16.msra.mxu1 %v3039_v25  ;;  %3052 = vmatprep.subr.bf16.mxu0 %v3406_v5  ;;  %v3071_v25 = vpack.c.bf16 %v2099_v23, %v2098_v22  ;;  %p3357_p2 = scmp.ne.s32.totalorder %s2279_s13, %s3356_s19  ;;  %p3362_p4 = scmp.lt.s32.totalorder %s3360_s29, %s3356_s19 }
0x159c   :  { %3042 = vmatprep.subr.bf16.mxu1 %v3041_v32  ;;  %v2174_v32 = vld [vmem:[#allocation16 + $0x10] sm:$0xff] }
0x159d   :  { %p3363_p5 = por %p3362_p4, %p3361_p3 }
0x159f   :  { %3044 = vmatpush3.bf16.msra.mxu1 %v3043_v35  ;;  %v3077_v35 = vpack.c.bf16 %v2175_v34, %v2174_v32  ;;  %p3364_p6 = pnand %p3363_p5, %p3357_p2 }
0x15a0   :  { %3046 = vmatprep.subr.bf16.mxu1 %v3045_v40  ;;  %v3080_v40 = vpack.c.bf16 %v2177_v38, %v2176_v36 }
0x15a3   :  { %3048 = vmatpush3.bf16.msra.mxu1 %v3047_v43  ;;  %v3083_v43 = vpack.c.bf16 %v2179_v41, %v2178_v39 }
0x15a4   :  { %3073 = vmatprep.subr.bf16.mxu1 %v3406_v5 }
0x166c   :  { %v1928_v47 = vpop.f32.mrb[16].mxu0 }
0x166d   :  { %v1929_v48 = vadd.f32 %v1928_v47, %v1855_v45  ;;  %v1930_v49 = vpop.f32.mrb[17].mxu0  ;;  %v2181_v45 = vld [vmem:[#allocation16 + $0x48] sm:$0xff] }
0x166e   :  { %v1931_v50 = vadd.f32 %v1930_v49, %v1859_v46  ;;  %v3086_v46 = vpack.c.bf16 %v2181_v45, %v2180_v44 }
0x166f   :  { %v1935_v51 = vmul.f32 0.70710677, %v1929_v48  ;;  %v1933_v56 = vmul.f32 0.5, %v1929_v48 }
0x1670   :  { %v1936_v52 = vmul.f32 0.70710677, %v1931_v50  ;;  %v1934_v54 = vmul.f32 0.5, %v1931_v50 }
0x1671   :  { %3146 = verf.f32 %v1935_v51  ;;  %v2321_v51 = vld [vmem:[#allocation11 + $0x1] ss:$0 sm:$0xff] }
0x1672   :  { %3148 = verf.f32 %v1936_v52 }
0x167b   :  { %v3147_v26 = vpop.eup %3146 }
0x167c   :  { %v3149_v30 = vpop.eup %3148  ;;  %v1939_v53 = vadd.f32 1.0, %v3147_v26  ;;  %v2322_v26 = vld [vmem:[#allocation13 + $0x1] ss:$0 sm:$0xff] }
0x167d   :  { %v1940_v55 = vadd.f32 1.0, %v3149_v30 }
0x167e   :  { %v1941_v58 = vmul.f32 %v1939_v53, %v1933_v56 }
0x167f   :  { %v1942_v59 = vmul.f32 %v1940_v55, %v1934_v54  ;;  %v2182_v54 = vld [vmem:[#allocation16 + $0x50] sm:$0xff]  ;;  %v2183_v55 = vld [vmem:[#allocation16 + $0x58] sm:$0xff] }
0x1680   :  { %v3089_v56 = vpack.c.bf16 %v2183_v55, %v2182_v54 }
0x1681   :  { %2048 = vmatprep.mubr.f32.mxu1 %v1942_v59  ;;  %v2184_v59 = vld [vmem:[#allocation16 + $0x60] sm:$0xff] }
0x1682   :  { %2049 = vmatmul.mubr.f32.vlgmr.msra.gmra.mrb[16].mxu1 %v1941_v58  ;;  %v2185_v58 = vld [vmem:[#allocation16 + $0x68] sm:$0xff] }
0x1683   :  { %2758 = vmatprep.mubr.msk.f32.mxu1 %vm3408_vm0, %v3407_v57  ;;  %v2086_v57 = vld [vmem:[%s3967_s16 + $0x10] sm:$0xff]  ;;  %3075 = vmatpush3.bf16.msra.mxu1 %v3074_v33 }
0x1684   :  { %v3053_v3 = vpack.c.bf16 %v2087_v2, %v2086_v57  ;;  %3076 = vmatprep.subr.bf16.mxu1 %v3406_v5 }
0x1686   :  { %3054 = vmatpush3.bf16.msra.mxu0 %v3053_v3 }
0x1687   :  { %3055 = vmatprep.subr.bf16.mxu0 %v3406_v5  ;;  %3078 = vmatpush3.bf16.msra.mxu1 %v3077_v35 }
0x1688   :  { %3079 = vmatprep.subr.bf16.mxu1 %v3406_v5 }
0x168a   :  { %3057 = vmatpush3.bf16.msra.mxu0 %v3056_v6 }
0x168b   :  { %3058 = vmatprep.subr.bf16.mxu0 %v3406_v5  ;;  %3081 = vmatpush3.bf16.msra.mxu1 %v3080_v40 }
0x168c   :  { %3082 = vmatprep.subr.bf16.mxu1 %v3406_v5 }
0x168e   :  { %3060 = vmatpush3.bf16.msra.mxu0 %v3059_v42 }
0x168f   :  { %3061 = vmatprep.subr.bf16.mxu0 %v3406_v5  ;;  %3084 = vmatpush3.bf16.msra.mxu1 %v3083_v43 }
0x1690   :  { %3085 = vmatprep.subr.bf16.mxu1 %v3406_v5 }
0x1692   :  { %3063 = vmatpush3.bf16.msra.mxu0 %v3062_v17 }
0x1693   :  { %3064 = vmatprep.subr.bf16.mxu0 %v3406_v5  ;;  %3087 = vmatpush3.bf16.msra.mxu1 %v3086_v46 }
0x1694   :  { %3088 = vmatprep.subr.bf16.mxu1 %v3406_v5 }
0x1696   :  { %3066 = vmatpush3.bf16.msra.mxu0 %v3065_v19 }
0x1697   :  { %3067 = vmatprep.subr.bf16.mxu0 %v3406_v5  ;;  %3090 = vmatpush3.bf16.msra.mxu1 %v3089_v56 }
0x1698   :  { %3091 = vmatprep.subr.bf16.mxu1 %v3406_v5 }
0x169a   :  { %3069 = vmatpush3.bf16.msra.mxu0 %v3068_v9 }
0x169b   :  { %3070 = vmatprep.subr.bf16.mxu0 %v3406_v5 }
0x169e   :  { %3072 = vmatpush3.bf16.msra.mxu0 %v3071_v25 }
0x1755   :  { %v2474_v27 = vpop.f32.mrb[16].mxu1 }
0x1756   :  { %v2475_v60 = vpop.f32.mrb[17].mxu1 }
0x1757   :  { %v2476_v61 = vadd.f32 %v2475_v60, %v2474_v27  ;;  %v3092_v27 = vpack.c.bf16 %v2185_v58, %v2184_v59  ;;  %v2187_v60 = vld [vmem:[#allocation16 + $0x78] sm:$0xff] }
0x1759   :  { %v2051_v62 = vadd.f32 %v2476_v61, %v2320_v29  ;;  %v2186_v29 = vld [vmem:[#allocation16 + $0x70] sm:$0xff]  ;;  %3093 = vmatpush3.bf16.msra.mxu1 %v3092_v27 }
0x175a   :  { %v3095_v61 = vpack.c.bf16 %v2187_v60, %v2186_v29  ;;  %3094 = vmatprep.subr.bf16.mxu1 %v3406_v5 }
0x175b   :  { %v2054_v63 = vadd.f32 %v2051_v62, %v3857_v8  ;;  %v2100_v62 = vld [vmem:[#allocation14] sm:$0x1] }
0x175d   :  { %2059 = vadd.xlane.f32.xlu0 %v2054_v63  ;;  %3096 = vmatpush3.bf16.msra.mxu1 %v3095_v61 }
0x17ea   :  { %v2060_v8 = vpop.xlane.xlu0 %2059 }
0x17eb   :  { %v2061_v10 = vmul.f32 0.0078125, %v2060_v8 }
0x17ed   :  { %v2062_v12 = vsub.f32 %v2054_v63, %v2061_v10 }
0x17ef   :  { %v2063_v13 = vmul.f32 %v2062_v12, %v2062_v12 }
0x17f1   :  { %2064 = vadd.xlane.f32.xlu1 %v2063_v13 }
0x187e   :  { %v2065_v47 = vpop.xlane.xlu1 %2064 }
0x187f   :  { %v2066_v48 = vmul.f32 0.0078125, %v2065_v47 }
0x1881   :  { %v2067_v49 = vadd.f32 1e-12, %v2066_v48 }
0x1883   :  { %3150 = vrsqrt.f32 %v2067_v49 }
0x188d   :  { %v3151_v50 = vpop.eup %3150 }
0x188e   :  { %v2069_v52 = vmul.f32 %v3151_v50, %v2062_v12 }
0x1890   :  { %v2076_v30 = vmul.f32 %v2321_v51, %v2069_v52 }
0x1892   :  { %v2083_v53 = vadd.f32 %v2322_v26, %v2076_v30 }
0x1894   :  { %2724 = vmatmul.mubr.f32.vlgmr.msra.gmra.mrb[18].mxu0 %v2083_v53 }
0x1967   :  { %v2167_v63 = vpop.f32.mrb[18].mxu0 }
0x1968   :  { %v2168_v0 = vadd.f32 %v2167_v63, %v2100_v62  ;;  %v2725_v1 = vpop.f32.mrb[19].mxu0 }
0x196a   :  { %3152 = vtanh.f32 %v2168_v0 }
0x1974   :  { %v3153_v57 = vpop.eup %3152 }
0x1975   :  { %2759 = vmatmul.mubr.f32.vlgmr.msra.gmra.mrb[18].mxu1 %v3153_v57 }
0x1a48   :  { %v2255_v2 = vpop.f32.mrb[18].mxu1 }
0x1a49   :  { %v2256_v3 = vadd.f32 %v2255_v2, %v2188_v24  ;;  %v2760_v37 = vpop.f32.mrb[19].mxu1 }
0x1a4b   :  { %v2260_v4 = vsel %vm2259_vm3, %v2256_v3, -inf }
0x1a4c   :  { %2261 = vmax.xlane.f32.xlu0 %v2260_v4 }
0x1ad9   :  { %v2262_v6 = vpop.xlane.xlu0 %2261 }
0x1ada   :  { %v2263_v5 = vsub.f32 %v2256_v3, %v2262_v6 }
0x1adc   :  { %v2264_v8 = vmul.f32 1.442695, %v2263_v5 }
0x1ade   :  { %3154 = vpow2.f32 %v2264_v8 }
0x1ae8   :  { %v3155_v10 = vpop.eup %3154 }
0x1ae9   :  { %v2266_v12 = vsel %vm2259_vm3, %v3155_v10, 0.0 }
0x1aea   :  { %2267 = vadd.xlane.f32.xlu1 %v2266_v12 }
0x1b77   :  { %v2268_v13 = vpop.xlane.xlu1 %2267 }
0x1b78   :  { %3156 = vrcp.f32 %v2268_v13 }
0x1b82   :  { %v3157_v14 = vpop.eup %3156 }
0x1b83   :  { %v2270_v15 = vmul.f32 %v3157_v14, %v3155_v10 }
0x1b85   :  { %2271 = vst [vmem:[#allocation17] sm:$0x1] %v2270_v15 }
0x1b86   :  { %3367 = shalt.err (!%p3364_p6)
}
0x1b87   :  { %s3368_s24 = scalar_lea.hbm %s3971_s20, 16 }
0x1b88   :  { %p3369_p7 = scmp.ne.s32.totalorder %s3971_s20, %s3368_s24  ;;  %p3372_p8 = scmp.lt.u32.totalorder %s3368_s24, %s3971_s20 }
0x1b8a   :  { %p3374_p9 = pnand %p3372_p8, %p3369_p7 }
0x1b8c   :  { %3377 = shalt.err (!%p3374_p9)
}
0x1b8d   :  { %2281 = dma.vmem_to_hbm [thread:$0]  %s2279_s13, 16, %s3971_s20, [#allocation4]  }
0x1b8e   :  { %3388 = dma.done.wait [#allocation4], 16  }
0x1b8f   :  { %3389 = vsyncadd [#allocation4], 4294967280 }
0x1b90   :  { %2285 = vsyncpa [#allocation3], 1 }
0x1b91   :  { %2286 = vsyncpa [#allocation6], 1 }
0x1b92   :  { %2287 = vsyncpa [#allocation9], 1 }
0x1b93   :  { %2288 = vsyncpa [#allocation12], 1 }
0x1b94   :  { %2289 = vsyncpa [#allocation15], 1 }
0x1b95   :  { %2290 = vsyncpa [#allocation4], 1 }

</bundles_post_ra>
